<compile_context>
chip_gen: v7x
topology: tpu7x:2x2x1
jax: 0.10.0
libtpu: 0.0.40
codegen_flags: <defaults>
</compile_context>

<pallas_src>
import jax
import jax.numpy as jnp
from jax.experimental import pallas as pl
from jax.experimental.pallas import tpu as pltpu

# ----------------------- small config consistent with the module ------------
BS = 2                       # batch of clips
NUM_FRAMES = 2
NUM_FUTURE_FRAMES = 1
T = NUM_FRAMES + NUM_FUTURE_FRAMES
NUM_QUERIES = 4
NUM_KEYPOINTS = 4
NUM_FEATURE_LEVELS = 2       # == num_backbone_outs (avoids the 3x3/s2 extra-level branch)
HIDDEN_DIM = 32              # transformer.d_model; GroupNorm(32, 32) -> per-channel norm
NUM_DEC_LAYERS = 2
BACKBONE_CHANNELS = (8, 16)
BACKBONE_SPATIAL = ((16, 16), (8, 8))
N_IMGS = BS * NUM_FRAMES     # batched frames fed to the backbone
PARAM_PAD = 128              # lane-dense width of the packed input_proj params
HEAD_PAD = 128               # lane-dense padded width of the fused head output


# ---------------------------------------------------------------------------
# Kernel 1: input_proj for ALL levels in one pallas_call (transposed orientation).
#   per level: Conv2d(Cin, 32, k=1) + GroupNorm(32, 32)
# x is fed as (Cin, N*HW); y = W @ x is (32, N*HW) so every store is lane-dense.
# GroupNorm(32, 32) == per-(frame, channel) normalization over H*W; computed with
# a two-pass (subtract-mean-then-square) variance per frame segment of the lane dim.
# ---------------------------------------------------------------------------
def _make_proj_gn_kernel(level_shapes):
    """level_shapes: tuple of static (n_frames_total, hw, cin) per feature level."""
    nlev = len(level_shapes)
    cins = [s[2] for s in level_shapes]
    w_off = [0]
    for c in cins:
        w_off.append(w_off[-1] + c)
    scal_base = w_off[-1]           # start of the per-level (b, gamma, beta) columns

    def kernel(*refs):
        x_refs = refs[:nlev]
        p_ref = refs[nlev]
        o_refs = refs[nlev + 1:]
        p = p_ref[...]                                     # (32, PARAM_PAD)
        for lvl in range(nlev):
            n, hw, _ = level_shapes[lvl]
            w = p[:, w_off[lvl]:w_off[lvl + 1]]            # (32, cin)
            sc = scal_base + 3 * lvl
            b = p[:, sc + 0:sc + 1]                        # (32, 1)
            g = p[:, sc + 1:sc + 2]
            be = p[:, sc + 2:sc + 3]
            # 1x1 conv as one MXU matmul over all frames/pixels of this level.
            y = jnp.dot(w, x_refs[lvl][...],
                        preferred_element_type=jnp.float32) + b   # (32, n*hw)
            inv_hw = 1.0 / hw
            parts = []
            for f in range(n):                             # per-frame GroupNorm stats
                seg = y[:, f * hw:(f + 1) * hw]            # (32, hw)
                mean = jnp.sum(seg, axis=1, keepdims=True) * inv_hw
                d = seg - mean
                var = jnp.sum(d * d, axis=1, keepdims=True) * inv_hw
                parts.append((d * jax.lax.rsqrt(var + 1e-5)) * g + be)
            # single lane-dense store per level
            o_refs[lvl][...] = jnp.concatenate(parts, axis=1)

    return kernel


def pack_proj_params(proj_params):
    """Pack (w(cin,32), b(32,), gamma(32,), beta(32,)) per level into ONE (32,128)
    lane-dense array.  Built once at parameter-creation time (not per forward)."""
    cols = [w.T for (w, _, _, _) in proj_params]                       # (32, cin) each
    for (_, b, g, be) in proj_params:
        cols.extend([b.reshape(-1, 1), g.reshape(-1, 1), be.reshape(-1, 1)])
    packed = jnp.concatenate(cols, axis=1)
    pad = PARAM_PAD - packed.shape[1]
    return jnp.concatenate(
        [packed, jnp.zeros((packed.shape[0], pad), jnp.float32)], axis=1)


def input_proj_all(feats_nchw, packed_params):
    """Fused input_proj (1x1 conv + GroupNorm) for all levels, one pallas_call.

    feats_nchw: list of (N, Cin_l, H_l, W_l) float32
    returns:    list of (HIDDEN_DIM, N, H_l, W_l) float32 (channels-leading)
    """
    xs, shapes, spatial = [], [], []
    for x in feats_nchw:
        n, cin, h, w = x.shape
        hw = h * w
        # Only a leading-dim N<->C permute (no minor-dim shuffle), then a free reshape.
        xs.append(jnp.transpose(x, (1, 0, 2, 3)).reshape(cin, n * hw))
        shapes.append((n, hw, cin))
        spatial.append((n, h, w))

    cout = HIDDEN_DIM
    in_specs = [pl.BlockSpec(x.shape, lambda i: (0, 0)) for x in xs]
    in_specs.append(pl.BlockSpec(packed_params.shape, lambda i: (0, 0)))
    out_shape = tuple(jax.ShapeDtypeStruct((cout, n * hw), jnp.float32)
                      for (n, hw, _) in shapes)
    out_specs = tuple(pl.BlockSpec((cout, n * hw), lambda i: (0, 0))
                      for (n, hw, _) in shapes)

    outs = pl.pallas_call(
        _make_proj_gn_kernel(tuple(shapes)),
        out_shape=out_shape,
        grid=(1,),
        in_specs=in_specs,
        out_specs=out_specs,
        compiler_params=pltpu.CompilerParams(dimension_semantics=("arbitrary",)),
    )(*xs, packed_params)
    # free reshape to (C, N, H, W); channels-leading layout of the original
    # (bs, c, nf, h, w) regroup (leading dims permuted only).
    return [o.reshape(cout, n, h, w) for o, (n, h, w) in zip(outs, spatial)]


# ---------------------------------------------------------------------------
# Kernel 2: fused prediction heads for ALL decoder layers at once.
#   class_embed : Linear(d, 2)
#   root_embed  : MLP(d, d, 4, 1) == Linear(d, 4)  (+ inverse_sigmoid(ref) on the
#                 first 2 columns, then sigmoid over ALL 4 root columns)
#   joint_embed : (K-1) x Linear(d, 4), concatenated along columns (no sigmoid)
# Heads are shared across decoder layers, so the layer axis folds into rows.
# Head weights are pre-fused (once) into one zero-padded (C, 128) matrix -> a single
# MXU push and ONE lane-dense (L*M, 128) store.
# ---------------------------------------------------------------------------
def _head_kernel(hs_ref, ref_ref, w_ref, b_ref, o_ref):
    # hs_ref  : (M, C)
    # ref_ref : (M, 2)    reference points in [0, 1]
    # w_ref   : (C, 128)  cols 0:4 root, 4:6 class, 6:6+4*(K-1) joint, rest 0
    # b_ref   : (1, 128)
    # o_ref   : (M, 128)  cols 0:4 sigmoid(root + inv_sig(ref)), 4:6 class logits,
    #                     6:..  joint values, rest = pad (ignored)
    y = jnp.dot(hs_ref[...], w_ref[...],
                preferred_element_type=jnp.float32) + b_ref[...]
    # inverse_sigmoid (deformable-DETR convention, eps = 1e-5), narrow (M, 2)
    r = jnp.clip(ref_ref[...], 0.0, 1.0)
    eps = 1e-5
    inv = jnp.log(jnp.maximum(r, eps) / jnp.maximum(1.0 - r, eps))
    col = jax.lax.broadcasted_iota(jnp.int32, y.shape, 1)
    # add the reference offset only to the first two (root x, y) lanes
    add = jnp.where(col == 0, inv[:, 0:1],
                    jnp.where(col == 1, inv[:, 1:2], 0.0))
    z = y + add
    # sigmoid only the 4 root columns (matches tmp.sigmoid() in the reference)
    o_ref[...] = jnp.where(col < 4, jax.nn.sigmoid(z), z)


def pack_head_params(wc, bc, wr, br, wj, bj):
    """Fuse [root | class | joint | zero pad] head weights once at param creation."""
    c = wr.shape[0]
    ncols = wr.shape[1] + wc.shape[1] + wj.shape[1]
    w = jnp.concatenate(
        [wr, wc, wj, jnp.zeros((c, HEAD_PAD - ncols), jnp.float32)], axis=1)
    b = jnp.concatenate(
        [br, bc, bj, jnp.zeros((1, HEAD_PAD - ncols), jnp.float32)], axis=1)
    return w, b


def prediction_heads(hs, ref_all, w_fused, b_fused):
    """hs: (L, bs, t, q, C); ref_all: (L, bs, t, q, 2). Returns (L*bs*t*q, 128)."""
    L, bs, t, q, c = hs.shape
    M = L * bs * t * q
    hs_flat = hs.reshape(M, c)
    ref_flat = ref_all.reshape(M, 2)
    return pl.pallas_call(
        _head_kernel,
        out_shape=jax.ShapeDtypeStruct((M, HEAD_PAD), jnp.float32),
        grid=(1,),
        in_specs=[
            pl.BlockSpec((M, c), lambda i: (0, 0)),
            pl.BlockSpec((M, 2), lambda i: (0, 0)),
            pl.BlockSpec((c, HEAD_PAD), lambda i: (0, 0)),
            pl.BlockSpec((1, HEAD_PAD), lambda i: (0, 0)),
        ],
        out_specs=pl.BlockSpec((M, HEAD_PAD), lambda i: (0, 0)),
        compiler_params=pltpu.CompilerParams(dimension_semantics=("arbitrary",)),
    )(hs_flat, ref_flat, w_fused, b_fused)


# ---------------------------------------------------------------------------
# Full forward glue
# ---------------------------------------------------------------------------
def snipper_forward(features, masks_in, pos_in, params, hs, heatmaps,
                    init_reference, inter_references):
    L = NUM_DEC_LAYERS
    bs, t, q = BS, T, NUM_QUERIES
    K = NUM_KEYPOINTS

    # ---- input projection: both levels fused in one Pallas call, channels-leading.
    srcs = input_proj_all(features, params["proj_packed"])
    # TODO(synk): extra pyramid levels (Conv2d k=3 s=2 + GroupNorm) and mask
    # interpolation are not exercised (num_feature_levels == num_backbone_outs).

    # ---- frame regrouping (feeds the external transformer only). All free reshapes;
    # srcs keep the channels-leading layout of the original (bs, c, nf, h, w) regroup.
    masks, pos = [], []
    for l in range(NUM_FEATURE_LEVELS):
        c, n, h, w = srcs[l].shape
        srcs[l] = srcs[l].reshape(c, n // NUM_FRAMES, NUM_FRAMES, h, w)
        masks.append(masks_in[l].reshape(n // NUM_FRAMES, NUM_FRAMES, h, w, 1))
        pos.append(pos_in[l].reshape(n // NUM_FRAMES, NUM_FRAMES, HIDDEN_DIM, h, w))
    # TODO(synk): the deformable transformer (encoder/decoder) is an external module
    # not defined in the reference file; hs / heatmaps / references are supplied as
    # synthetic, deterministic inputs instead.

    # ---- prediction heads: one fused Pallas kernel across all decoder layers
    ref_all = jnp.concatenate([init_reference[None], inter_references], axis=0)
    out_heads = prediction_heads(hs, ref_all, params["head_w"], params["head_b"])
    nj = 4 * (K - 1)
    root = out_heads[:, 0:4]
    cls = out_heads[:, 4:6]
    joint = out_heads[:, 6:6 + nj]

    outputs_classes = jnp.transpose(cls.reshape(L, bs, t, q, 2), (0, 1, 3, 2, 4))
    outputs_roots = jnp.transpose(root.reshape(L, bs, t, q, 1, 4), (0, 1, 3, 2, 4, 5))
    outputs_joints = jnp.transpose(joint.reshape(L, bs, t, q, K - 1, 4), (0, 1, 3, 2, 4, 5))
    outputs_kpts = jnp.concatenate([outputs_roots, outputs_joints], axis=-2)  # (L,bs,q,t,K,4)

    out = {
        "pred_logits": outputs_classes[-1],            # (bs, q, t, 2)
        "pred_kpts2d": outputs_kpts[-1, ..., 0:3],     # (bs, q, t, K, 3)
        "pred_depth": outputs_kpts[-1, ..., 3:4],      # (bs, q, t, K, 1)
        "heatmaps": heatmaps,
        # extra key (not in the reference) so the fused input_proj outputs can be
        # materialized/blocked on even though the downstream transformer is a stub.
        "srcs": srcs,
    }
    aux_outputs = []
    for i in range(L - 1):
        aux_outputs.append({
            "pred_logits": outputs_classes[i],
            "pred_kpts2d": outputs_kpts[i, ..., 0:3],
            "pred_depth": outputs_kpts[i, ..., 3:4],
        })
    out["aux_outputs"] = aux_outputs
    return out, (init_reference, inter_references, None)


# ---------------------------------------------------------------------------
if __name__ == "__main__":
    key = jax.random.PRNGKey(0)
    ks = iter(jax.random.split(key, 32))

    # ---- deterministic parameters (packed ONCE, outside the forward path) --
    proj_params = []
    for cin in BACKBONE_CHANNELS:
        w = 0.05 * jax.random.normal(next(ks), (cin, HIDDEN_DIM), jnp.float32)
        b = 0.05 * jax.random.normal(next(ks), (HIDDEN_DIM,), jnp.float32)
        g = 1.0 + 0.05 * jax.random.normal(next(ks), (HIDDEN_DIM,), jnp.float32)
        beta = 0.05 * jax.random.normal(next(ks), (HIDDEN_DIM,), jnp.float32)
        proj_params.append((w, b, g, beta))

    class_w = 0.05 * jax.random.normal(next(ks), (HIDDEN_DIM, 2), jnp.float32)
    class_b = 0.05 * jax.random.normal(next(ks), (1, 2), jnp.float32)
    root_w = 0.05 * jax.random.normal(next(ks), (HIDDEN_DIM, 4), jnp.float32)
    root_b = 0.05 * jax.random.normal(next(ks), (1, 4), jnp.float32)
    nj = 4 * (NUM_KEYPOINTS - 1)
    joint_w = 0.05 * jax.random.normal(next(ks), (HIDDEN_DIM, nj), jnp.float32)
    joint_b = 0.05 * jax.random.normal(next(ks), (1, nj), jnp.float32)

    head_w, head_b = pack_head_params(class_w, class_b, root_w, root_b, joint_w, joint_b)
    params = {
        "proj_packed": pack_proj_params(proj_params),   # (32, 128), one DMA
        "head_w": head_w,                                # (32, 128), fused once
        "head_b": head_b,                                # (1, 128)
    }

    # query_embed (feeds the transformer stub only)
    query_embed = 0.05 * jax.random.normal(
        next(ks), (NUM_QUERIES * T, HIDDEN_DIM * 2), jnp.float32)

    # ---- synthetic backbone outputs (TODO(synk): real backbone not provided)
    features, masks_in, pos_in = [], [], []
    for cin, (h, w) in zip(BACKBONE_CHANNELS, BACKBONE_SPATIAL):
        features.append(jax.random.normal(next(ks), (N_IMGS, cin, h, w), jnp.float32))
        masks_in.append(jnp.zeros((N_IMGS, h, w), jnp.bool_))
        pos_in.append(jax.random.normal(next(ks), (N_IMGS, HIDDEN_DIM, h, w), jnp.float32))

    # ---- synthetic transformer outputs ------------------------------------
    hs = jax.random.normal(
        next(ks), (NUM_DEC_LAYERS, BS, T, NUM_QUERIES, HIDDEN_DIM), jnp.float32)
    heatmaps = jax.random.normal(next(ks), (BS, T, NUM_KEYPOINTS, 16, 16), jnp.float32)
    init_reference = jax.nn.sigmoid(
        jax.random.normal(next(ks), (BS, T, NUM_QUERIES, 2), jnp.float32))
    inter_references = jax.nn.sigmoid(
        jax.random.normal(next(ks), (NUM_DEC_LAYERS - 1, BS, T, NUM_QUERIES, 2), jnp.float32))

    out, _ = snipper_forward(features, masks_in, pos_in, params, hs, heatmaps,
                             init_reference, inter_references)
    jax.block_until_ready(out["pred_logits"])
    jax.block_until_ready(out["pred_kpts2d"])
    jax.block_until_ready(out["pred_depth"])
    jax.block_until_ready(out["srcs"][0])
    jax.block_until_ready(out["srcs"][1])

    assert out["pred_logits"].shape == (BS, NUM_QUERIES, T, 2)
    assert out["pred_kpts2d"].shape == (BS, NUM_QUERIES, T, NUM_KEYPOINTS, 3)
    assert out["pred_depth"].shape == (BS, NUM_QUERIES, T, NUM_KEYPOINTS, 1)
    assert out["srcs"][0].shape == (HIDDEN_DIM, BS, NUM_FRAMES, 16, 16)
    assert out["srcs"][1].shape == (HIDDEN_DIM, BS, NUM_FRAMES, 8, 8)
    print("KERNEL_OK")
</pallas_src>

<mosaic_0001>
module attributes {stable_mosaic.version = 11 : i64} {
  func.func @kernel(%arg0: i32, %arg1: memref<8x1024xf32, #tpu.memory_space<vmem>>, %arg2: memref<16x256xf32, #tpu.memory_space<vmem>>, %arg3: memref<32x128xf32, #tpu.memory_space<vmem>>, %arg4: memref<32x1024xf32, #tpu.memory_space<vmem>>, %arg5: memref<32x256xf32, #tpu.memory_space<vmem>>) attributes {dimension_semantics = [#tpu.dimension_semantics<arbitrary>], iteration_bounds = array<i64: 1>, scalar_prefetch = 0 : i64, scratch_operands = 0 : i64, tpu.core_type = #tpu.core_type<tc>, window_params = [{pipeline_mode = #tpu.pipeline_mode<synchronous>, transform_indices = @transform_0, window_bounds = array<i64: 8, 1024>}, {pipeline_mode = #tpu.pipeline_mode<synchronous>, transform_indices = @transform_1, window_bounds = array<i64: 16, 256>}, {pipeline_mode = #tpu.pipeline_mode<synchronous>, transform_indices = @transform_2, window_bounds = array<i64: 32, 128>}, {pipeline_mode = #tpu.pipeline_mode<synchronous>, transform_indices = @transform_3, window_bounds = array<i64: 32, 1024>}, {pipeline_mode = #tpu.pipeline_mode<synchronous>, transform_indices = @transform_4, window_bounds = array<i64: 32, 256>}]} {
    %c0 = arith.constant 0 : index
    %c0_0 = arith.constant 0 : index
    %0 = vector.load %arg3[%c0, %c0_0] : memref<32x128xf32, #tpu.memory_space<vmem>>, vector<32x128xf32>
    %1 = vector.extract_strided_slice %0 {offsets = [0, 0], sizes = [32, 8], strides = [1, 1]} : vector<32x128xf32> to vector<32x8xf32>
    %2 = vector.extract_strided_slice %0 {offsets = [0, 24], sizes = [32, 1], strides = [1, 1]} : vector<32x128xf32> to vector<32x1xf32>
    %3 = vector.extract_strided_slice %0 {offsets = [0, 25], sizes = [32, 1], strides = [1, 1]} : vector<32x128xf32> to vector<32x1xf32>
    %4 = vector.extract_strided_slice %0 {offsets = [0, 26], sizes = [32, 1], strides = [1, 1]} : vector<32x128xf32> to vector<32x1xf32>
    %c0_1 = arith.constant 0 : index
    %c0_2 = arith.constant 0 : index
    %5 = vector.load %arg1[%c0_1, %c0_2] : memref<8x1024xf32, #tpu.memory_space<vmem>>, vector<8x1024xf32>
    %cst = arith.constant dense<0.000000e+00> : vector<32x1024xf32>
    %6 = tpu.matmul %1, %5, %cst {dimension_numbers = #tpu.dot_dimension_numbers<[1], [0], [0], [1], [0, 0, 1, 1], [], []>} : vector<32x8xf32>, vector<8x1024xf32>, vector<32x1024xf32> -> vector<32x1024xf32>
    %7 = vector.broadcast %2 : vector<32x1xf32> to vector<32x1024xf32>
    %8 = arith.addf %6, %7 : vector<32x1024xf32>
    %9 = vector.extract_strided_slice %8 {offsets = [0, 0], sizes = [32, 256], strides = [1, 1]} : vector<32x1024xf32> to vector<32x256xf32>
    %cst_3 = arith.constant dense<0.000000e+00> : vector<32xf32>
    %10 = vector.multi_reduction <add>, %9, %cst_3 [1] : vector<32x256xf32> to vector<32xf32>
    %11 = vector.shape_cast %10 : vector<32xf32> to vector<32x1xf32>
    %cst_4 = arith.constant 3.906250e-03 : f32
    %12 = vector.broadcast %cst_4 : f32 to vector<32x1xf32>
    %13 = arith.mulf %11, %12 : vector<32x1xf32>
    %14 = vector.broadcast %13 : vector<32x1xf32> to vector<32x256xf32>
    %15 = arith.subf %9, %14 : vector<32x256xf32>
    %16 = arith.mulf %15, %15 : vector<32x256xf32>
    %cst_5 = arith.constant dense<0.000000e+00> : vector<32xf32>
    %17 = vector.multi_reduction <add>, %16, %cst_5 [1] : vector<32x256xf32> to vector<32xf32>
    %18 = vector.shape_cast %17 : vector<32xf32> to vector<32x1xf32>
    %cst_6 = arith.constant 3.906250e-03 : f32
    %19 = vector.broadcast %cst_6 : f32 to vector<32x1xf32>
    %20 = arith.mulf %18, %19 : vector<32x1xf32>
    %cst_7 = arith.constant 9.99999974E-6 : f32
    %21 = vector.broadcast %cst_7 : f32 to vector<32x1xf32>
    %22 = arith.addf %20, %21 : vector<32x1xf32>
    %23 = math.rsqrt %22 : vector<32x1xf32>
    %24 = vector.broadcast %23 : vector<32x1xf32> to vector<32x256xf32>
    %25 = arith.mulf %15, %24 : vector<32x256xf32>
    %26 = vector.broadcast %3 : vector<32x1xf32> to vector<32x256xf32>
    %27 = arith.mulf %25, %26 : vector<32x256xf32>
    %28 = vector.broadcast %4 : vector<32x1xf32> to vector<32x256xf32>
    %29 = arith.addf %27, %28 : vector<32x256xf32>
    %30 = vector.extract_strided_slice %8 {offsets = [0, 256], sizes = [32, 256], strides = [1, 1]} : vector<32x1024xf32> to vector<32x256xf32>
    %cst_8 = arith.constant dense<0.000000e+00> : vector<32xf32>
    %31 = vector.multi_reduction <add>, %30, %cst_8 [1] : vector<32x256xf32> to vector<32xf32>
    %32 = vector.shape_cast %31 : vector<32xf32> to vector<32x1xf32>
    %cst_9 = arith.constant 3.906250e-03 : f32
    %33 = vector.broadcast %cst_9 : f32 to vector<32x1xf32>
    %34 = arith.mulf %32, %33 : vector<32x1xf32>
    %35 = vector.broadcast %34 : vector<32x1xf32> to vector<32x256xf32>
    %36 = arith.subf %30, %35 : vector<32x256xf32>
    %37 = arith.mulf %36, %36 : vector<32x256xf32>
    %cst_10 = arith.constant dense<0.000000e+00> : vector<32xf32>
    %38 = vector.multi_reduction <add>, %37, %cst_10 [1] : vector<32x256xf32> to vector<32xf32>
    %39 = vector.shape_cast %38 : vector<32xf32> to vector<32x1xf32>
    %cst_11 = arith.constant 3.906250e-03 : f32
    %40 = vector.broadcast %cst_11 : f32 to vector<32x1xf32>
    %41 = arith.mulf %39, %40 : vector<32x1xf32>
    %cst_12 = arith.constant 9.99999974E-6 : f32
    %42 = vector.broadcast %cst_12 : f32 to vector<32x1xf32>
    %43 = arith.addf %41, %42 : vector<32x1xf32>
    %44 = math.rsqrt %43 : vector<32x1xf32>
    %45 = vector.broadcast %44 : vector<32x1xf32> to vector<32x256xf32>
    %46 = arith.mulf %36, %45 : vector<32x256xf32>
    %47 = vector.broadcast %3 : vector<32x1xf32> to vector<32x256xf32>
    %48 = arith.mulf %46, %47 : vector<32x256xf32>
    %49 = vector.broadcast %4 : vector<32x1xf32> to vector<32x256xf32>
    %50 = arith.addf %48, %49 : vector<32x256xf32>
    %51 = vector.extract_strided_slice %8 {offsets = [0, 512], sizes = [32, 256], strides = [1, 1]} : vector<32x1024xf32> to vector<32x256xf32>
    %cst_13 = arith.constant dense<0.000000e+00> : vector<32xf32>
    %52 = vector.multi_reduction <add>, %51, %cst_13 [1] : vector<32x256xf32> to vector<32xf32>
    %53 = vector.shape_cast %52 : vector<32xf32> to vector<32x1xf32>
    %cst_14 = arith.constant 3.906250e-03 : f32
    %54 = vector.broadcast %cst_14 : f32 to vector<32x1xf32>
    %55 = arith.mulf %53, %54 : vector<32x1xf32>
    %56 = vector.broadcast %55 : vector<32x1xf32> to vector<32x256xf32>
    %57 = arith.subf %51, %56 : vector<32x256xf32>
    %58 = arith.mulf %57, %57 : vector<32x256xf32>
    %cst_15 = arith.constant dense<0.000000e+00> : vector<32xf32>
    %59 = vector.multi_reduction <add>, %58, %cst_15 [1] : vector<32x256xf32> to vector<32xf32>
    %60 = vector.shape_cast %59 : vector<32xf32> to vector<32x1xf32>
    %cst_16 = arith.constant 3.906250e-03 : f32
    %61 = vector.broadcast %cst_16 : f32 to vector<32x1xf32>
    %62 = arith.mulf %60, %61 : vector<32x1xf32>
    %cst_17 = arith.constant 9.99999974E-6 : f32
    %63 = vector.broadcast %cst_17 : f32 to vector<32x1xf32>
    %64 = arith.addf %62, %63 : vector<32x1xf32>
    %65 = math.rsqrt %64 : vector<32x1xf32>
    %66 = vector.broadcast %65 : vector<32x1xf32> to vector<32x256xf32>
    %67 = arith.mulf %57, %66 : vector<32x256xf32>
    %68 = vector.broadcast %3 : vector<32x1xf32> to vector<32x256xf32>
    %69 = arith.mulf %67, %68 : vector<32x256xf32>
    %70 = vector.broadcast %4 : vector<32x1xf32> to vector<32x256xf32>
    %71 = arith.addf %69, %70 : vector<32x256xf32>
    %72 = vector.extract_strided_slice %8 {offsets = [0, 768], sizes = [32, 256], strides = [1, 1]} : vector<32x1024xf32> to vector<32x256xf32>
    %cst_18 = arith.constant dense<0.000000e+00> : vector<32xf32>
    %73 = vector.multi_reduction <add>, %72, %cst_18 [1] : vector<32x256xf32> to vector<32xf32>
    %74 = vector.shape_cast %73 : vector<32xf32> to vector<32x1xf32>
    %cst_19 = arith.constant 3.906250e-03 : f32
    %75 = vector.broadcast %cst_19 : f32 to vector<32x1xf32>
    %76 = arith.mulf %74, %75 : vector<32x1xf32>
    %77 = vector.broadcast %76 : vector<32x1xf32> to vector<32x256xf32>
    %78 = arith.subf %72, %77 : vector<32x256xf32>
    %79 = arith.mulf %78, %78 : vector<32x256xf32>
    %cst_20 = arith.constant dense<0.000000e+00> : vector<32xf32>
    %80 = vector.multi_reduction <add>, %79, %cst_20 [1] : vector<32x256xf32> to vector<32xf32>
    %81 = vector.shape_cast %80 : vector<32xf32> to vector<32x1xf32>
    %cst_21 = arith.constant 3.906250e-03 : f32
    %82 = vector.broadcast %cst_21 : f32 to vector<32x1xf32>
    %83 = arith.mulf %81, %82 : vector<32x1xf32>
    %cst_22 = arith.constant 9.99999974E-6 : f32
    %84 = vector.broadcast %cst_22 : f32 to vector<32x1xf32>
    %85 = arith.addf %83, %84 : vector<32x1xf32>
    %86 = math.rsqrt %85 : vector<32x1xf32>
    %87 = vector.broadcast %86 : vector<32x1xf32> to vector<32x256xf32>
    %88 = arith.mulf %78, %87 : vector<32x256xf32>
    %89 = vector.broadcast %3 : vector<32x1xf32> to vector<32x256xf32>
    %90 = arith.mulf %88, %89 : vector<32x256xf32>
    %91 = vector.broadcast %4 : vector<32x1xf32> to vector<32x256xf32>
    %92 = arith.addf %90, %91 : vector<32x256xf32>
    %93 = tpu.concatenate %29, %50, %71, %92 in 1 : vector<32x256xf32>, vector<32x256xf32>, vector<32x256xf32>, vector<32x256xf32> -> vector<32x1024xf32>
    %c0_23 = arith.constant 0 : index
    %c0_24 = arith.constant 0 : index
    %94 = vector.load %arg4[%c0_23, %c0_24] : memref<32x1024xf32, #tpu.memory_space<vmem>>, vector<32x1024xf32>
    tpu.vector_store %arg4[%c0_23, %c0_24], %93 {strides = array<i32>} : memref<32x1024xf32, #tpu.memory_space<vmem>>, vector<32x1024xf32>,
    %95 = vector.extract_strided_slice %0 {offsets = [0, 8], sizes = [32, 16], strides = [1, 1]} : vector<32x128xf32> to vector<32x16xf32>
    %96 = vector.extract_strided_slice %0 {offsets = [0, 27], sizes = [32, 1], strides = [1, 1]} : vector<32x128xf32> to vector<32x1xf32>
    %97 = vector.extract_strided_slice %0 {offsets = [0, 28], sizes = [32, 1], strides = [1, 1]} : vector<32x128xf32> to vector<32x1xf32>
    %98 = vector.extract_strided_slice %0 {offsets = [0, 29], sizes = [32, 1], strides = [1, 1]} : vector<32x128xf32> to vector<32x1xf32>
    %c0_25 = arith.constant 0 : index
    %c0_26 = arith.constant 0 : index
    %99 = vector.load %arg2[%c0_25, %c0_26] : memref<16x256xf32, #tpu.memory_space<vmem>>, vector<16x256xf32>
    %cst_27 = arith.constant dense<0.000000e+00> : vector<32x256xf32>
    %100 = tpu.matmul %95, %99, %cst_27 {dimension_numbers = #tpu.dot_dimension_numbers<[1], [0], [0], [1], [0, 0, 1, 1], [], []>} : vector<32x16xf32>, vector<16x256xf32>, vector<32x256xf32> -> vector<32x256xf32>
    %101 = vector.broadcast %96 : vector<32x1xf32> to vector<32x256xf32>
    %102 = arith.addf %100, %101 : vector<32x256xf32>
    %103 = vector.extract_strided_slice %102 {offsets = [0, 0], sizes = [32, 64], strides = [1, 1]} : vector<32x256xf32> to vector<32x64xf32>
    %cst_28 = arith.constant dense<0.000000e+00> : vector<32xf32>
    %104 = vector.multi_reduction <add>, %103, %cst_28 [1] : vector<32x64xf32> to vector<32xf32>
    %105 = vector.shape_cast %104 : vector<32xf32> to vector<32x1xf32>
    %cst_29 = arith.constant 1.562500e-02 : f32
    %106 = vector.broadcast %cst_29 : f32 to vector<32x1xf32>
    %107 = arith.mulf %105, %106 : vector<32x1xf32>
    %108 = vector.broadcast %107 : vector<32x1xf32> to vector<32x64xf32>
    %109 = arith.subf %103, %108 : vector<32x64xf32>
    %110 = arith.mulf %109, %109 : vector<32x64xf32>
    %cst_30 = arith.constant dense<0.000000e+00> : vector<32xf32>
    %111 = vector.multi_reduction <add>, %110, %cst_30 [1] : vector<32x64xf32> to vector<32xf32>
    %112 = vector.shape_cast %111 : vector<32xf32> to vector<32x1xf32>
    %cst_31 = arith.constant 1.562500e-02 : f32
    %113 = vector.broadcast %cst_31 : f32 to vector<32x1xf32>
    %114 = arith.mulf %112, %113 : vector<32x1xf32>
    %cst_32 = arith.constant 9.99999974E-6 : f32
    %115 = vector.broadcast %cst_32 : f32 to vector<32x1xf32>
    %116 = arith.addf %114, %115 : vector<32x1xf32>
    %117 = math.rsqrt %116 : vector<32x1xf32>
    %118 = vector.broadcast %117 : vector<32x1xf32> to vector<32x64xf32>
    %119 = arith.mulf %109, %118 : vector<32x64xf32>
    %120 = vector.broadcast %97 : vector<32x1xf32> to vector<32x64xf32>
    %121 = arith.mulf %119, %120 : vector<32x64xf32>
    %122 = vector.broadcast %98 : vector<32x1xf32> to vector<32x64xf32>
    %123 = arith.addf %121, %122 : vector<32x64xf32>
    %124 = vector.extract_strided_slice %102 {offsets = [0, 64], sizes = [32, 64], strides = [1, 1]} : vector<32x256xf32> to vector<32x64xf32>
    %cst_33 = arith.constant dense<0.000000e+00> : vector<32xf32>
    %125 = vector.multi_reduction <add>, %124, %cst_33 [1] : vector<32x64xf32> to vector<32xf32>
    %126 = vector.shape_cast %125 : vector<32xf32> to vector<32x1xf32>
    %cst_34 = arith.constant 1.562500e-02 : f32
    %127 = vector.broadcast %cst_34 : f32 to vector<32x1xf32>
    %128 = arith.mulf %126, %127 : vector<32x1xf32>
    %129 = vector.broadcast %128 : vector<32x1xf32> to vector<32x64xf32>
    %130 = arith.subf %124, %129 : vector<32x64xf32>
    %131 = arith.mulf %130, %130 : vector<32x64xf32>
    %cst_35 = arith.constant dense<0.000000e+00> : vector<32xf32>
    %132 = vector.multi_reduction <add>, %131, %cst_35 [1] : vector<32x64xf32> to vector<32xf32>
    %133 = vector.shape_cast %132 : vector<32xf32> to vector<32x1xf32>
    %cst_36 = arith.constant 1.562500e-02 : f32
    %134 = vector.broadcast %cst_36 : f32 to vector<32x1xf32>
    %135 = arith.mulf %133, %134 : vector<32x1xf32>
    %cst_37 = arith.constant 9.99999974E-6 : f32
    %136 = vector.broadcast %cst_37 : f32 to vector<32x1xf32>
    %137 = arith.addf %135, %136 : vector<32x1xf32>
    %138 = math.rsqrt %137 : vector<32x1xf32>
    %139 = vector.broadcast %138 : vector<32x1xf32> to vector<32x64xf32>
    %140 = arith.mulf %130, %139 : vector<32x64xf32>
    %141 = vector.broadcast %97 : vector<32x1xf32> to vector<32x64xf32>
    %142 = arith.mulf %140, %141 : vector<32x64xf32>
    %143 = vector.broadcast %98 : vector<32x1xf32> to vector<32x64xf32>
    %144 = arith.addf %142, %143 : vector<32x64xf32>
    %145 = vector.extract_strided_slice %102 {offsets = [0, 128], sizes = [32, 64], strides = [1, 1]} : vector<32x256xf32> to vector<32x64xf32>
    %cst_38 = arith.constant dense<0.000000e+00> : vector<32xf32>
    %146 = vector.multi_reduction <add>, %145, %cst_38 [1] : vector<32x64xf32> to vector<32xf32>
    %147 = vector.shape_cast %146 : vector<32xf32> to vector<32x1xf32>
    %cst_39 = arith.constant 1.562500e-02 : f32
    %148 = vector.broadcast %cst_39 : f32 to vector<32x1xf32>
    %149 = arith.mulf %147, %148 : vector<32x1xf32>
    %150 = vector.broadcast %149 : vector<32x1xf32> to vector<32x64xf32>
    %151 = arith.subf %145, %150 : vector<32x64xf32>
    %152 = arith.mulf %151, %151 : vector<32x64xf32>
    %cst_40 = arith.constant dense<0.000000e+00> : vector<32xf32>
    %153 = vector.multi_reduction <add>, %152, %cst_40 [1] : vector<32x64xf32> to vector<32xf32>
    %154 = vector.shape_cast %153 : vector<32xf32> to vector<32x1xf32>
    %cst_41 = arith.constant 1.562500e-02 : f32
    %155 = vector.broadcast %cst_41 : f32 to vector<32x1xf32>
    %156 = arith.mulf %154, %155 : vector<32x1xf32>
    %cst_42 = arith.constant 9.99999974E-6 : f32
    %157 = vector.broadcast %cst_42 : f32 to vector<32x1xf32>
    %158 = arith.addf %156, %157 : vector<32x1xf32>
    %159 = math.rsqrt %158 : vector<32x1xf32>
    %160 = vector.broadcast %159 : vector<32x1xf32> to vector<32x64xf32>
    %161 = arith.mulf %151, %160 : vector<32x64xf32>
    %162 = vector.broadcast %97 : vector<32x1xf32> to vector<32x64xf32>
    %163 = arith.mulf %161, %162 : vector<32x64xf32>
    %164 = vector.broadcast %98 : vector<32x1xf32> to vector<32x64xf32>
    %165 = arith.addf %163, %164 : vector<32x64xf32>
    %166 = vector.extract_strided_slice %102 {offsets = [0, 192], sizes = [32, 64], strides = [1, 1]} : vector<32x256xf32> to vector<32x64xf32>
    %cst_43 = arith.constant dense<0.000000e+00> : vector<32xf32>
    %167 = vector.multi_reduction <add>, %166, %cst_43 [1] : vector<32x64xf32> to vector<32xf32>
    %168 = vector.shape_cast %167 : vector<32xf32> to vector<32x1xf32>
    %cst_44 = arith.constant 1.562500e-02 : f32
    %169 = vector.broadcast %cst_44 : f32 to vector<32x1xf32>
    %170 = arith.mulf %168, %169 : vector<32x1xf32>
    %171 = vector.broadcast %170 : vector<32x1xf32> to vector<32x64xf32>
    %172 = arith.subf %166, %171 : vector<32x64xf32>
    %173 = arith.mulf %172, %172 : vector<32x64xf32>
    %cst_45 = arith.constant dense<0.000000e+00> : vector<32xf32>
    %174 = vector.multi_reduction <add>, %173, %cst_45 [1] : vector<32x64xf32> to vector<32xf32>
    %175 = vector.shape_cast %174 : vector<32xf32> to vector<32x1xf32>
    %cst_46 = arith.constant 1.562500e-02 : f32
    %176 = vector.broadcast %cst_46 : f32 to vector<32x1xf32>
    %177 = arith.mulf %175, %176 : vector<32x1xf32>
    %cst_47 = arith.constant 9.99999974E-6 : f32
    %178 = vector.broadcast %cst_47 : f32 to vector<32x1xf32>
    %179 = arith.addf %177, %178 : vector<32x1xf32>
    %180 = math.rsqrt %179 : vector<32x1xf32>
    %181 = vector.broadcast %180 : vector<32x1xf32> to vector<32x64xf32>
    %182 = arith.mulf %172, %181 : vector<32x64xf32>
    %183 = vector.broadcast %97 : vector<32x1xf32> to vector<32x64xf32>
    %184 = arith.mulf %182, %183 : vector<32x64xf32>
    %185 = vector.broadcast %98 : vector<32x1xf32> to vector<32x64xf32>
    %186 = arith.addf %184, %185 : vector<32x64xf32>
    %187 = tpu.concatenate %123, %144, %165, %186 in 1 : vector<32x64xf32>, vector<32x64xf32>, vector<32x64xf32>, vector<32x64xf32> -> vector<32x256xf32>
    %c0_48 = arith.constant 0 : index
    %c0_49 = arith.constant 0 : index
    %188 = vector.load %arg5[%c0_48, %c0_49] : memref<32x256xf32, #tpu.memory_space<vmem>>, vector<32x256xf32>
    tpu.vector_store %arg5[%c0_48, %c0_49], %187 {strides = array<i32>} : memref<32x256xf32, #tpu.memory_space<vmem>>, vector<32x256xf32>,
    return
  }
  func.func @transform_0(%arg0: i32) -> (i32, i32) {
    %c0_i32 = arith.constant 0 : i32
    %c0_i32_0 = arith.constant 0 : i32
    %c0_i32_1 = arith.constant 0 : i32
    return %c0_i32, %c0_i32_0 : i32, i32
  }
  func.func @transform_1(%arg0: i32) -> (i32, i32) {
    %c0_i32 = arith.constant 0 : i32
    %c0_i32_0 = arith.constant 0 : i32
    %c0_i32_1 = arith.constant 0 : i32
    return %c0_i32, %c0_i32_0 : i32, i32
  }
  func.func @transform_2(%arg0: i32) -> (i32, i32) {
    %c0_i32 = arith.constant 0 : i32
    %c0_i32_0 = arith.constant 0 : i32
    %c0_i32_1 = arith.constant 0 : i32
    return %c0_i32, %c0_i32_0 : i32, i32
  }
  func.func @transform_3(%arg0: i32) -> (i32, i32) {
    %c0_i32 = arith.constant 0 : i32
    %c0_i32_0 = arith.constant 0 : i32
    %c0_i32_1 = arith.constant 0 : i32
    return %c0_i32, %c0_i32_0 : i32, i32
  }
  func.func @transform_4(%arg0: i32) -> (i32, i32) {
    %c0_i32 = arith.constant 0 : i32
    %c0_i32_0 = arith.constant 0 : i32
    %c0_i32_1 = arith.constant 0 : i32
    return %c0_i32, %c0_i32_0 : i32, i32
  }
}

</mosaic_0001>

<bundles_post_ra>
// kernel: tpu_custom_call.1
= control target key start
LH: loop header
LB: loop body
LE: loop exit
PB: predicated region body
PF: predicated region fallthrough
CT: control target
= control target key end

     0   :  { %10 = vsyncpa [#allocation3], 0  ;;  %s2448_s0 = inlined_call_operand.hbm [shape: f32[8,1024], index: 0, kind: input, shape index: {}]   ;;  %s2449_s1 = inlined_call_operand.hbm [shape: f32[16,256], index: 1, kind: input, shape index: {}]   ;;  %s2450_s2 = inlined_call_operand.hbm [shape: f32[32,128], index: 2, kind: input, shape index: {}]   ;;  %s2451_s3 = inlined_call_operand.hbm [shape: f32[32,1024], index: 3, kind: output, shape index: {0}]   ;;  %s2452_s4 = inlined_call_operand.hbm [shape: f32[32,256], index: 4, kind: output, shape index: {1}]  }
   0x1   :  { %11 = vsyncpa [#allocation6], 0 }
   0x2   :  { %12 = vsyncpa [#allocation4], 0 }
   0x3   :  { %13 = vsyncpa [#allocation10], 0  ;;  %s1594_s15 = smov [#allocation5]   ;;  %s1476_s19 = scalar_lea.hbm %s2449_s1, 512 }
   0x4   :  { %s29_s16 = sshll.u32 %s1594_s15, 4  ;;  %p1477_p0 = scmp.ne.s32.totalorder %s2449_s1, %s1476_s19  ;;  %s30_s16 = int_to_ptr.vmem [resolvable:$true] %s29_s16 }
   0x5   :  { %p1480_p1 = scmp.lt.u32.totalorder %s1476_s19, %s2449_s1 }
   0x7   :  { %p1482_p2 = pnand %p1480_p1, %p1477_p0 }
   0x9   :  { %1485 = shalt.err (!%p1482_p2)
}
   0xa   :  { %s1486_s24 = scalar_lea.vmem %s30_s16, 512  ;;  %p1491_p4 = scmp.lt.s32.totalorder %s30_s16, %s30_s16 }
   0xb   :  { %p1487_p3 = scmp.ne.s32.totalorder %s30_s16, %s1486_s24  ;;  %p1492_p5 = scmp.lt.s32.totalorder %s1486_s24, %s1486_s24 }
   0xd   :  { %p1493_p6 = por %p1492_p5, %p1491_p4 }
   0xf   :  { %p1494_p7 = pnand %p1493_p6, %p1487_p3 }
  0x11   :  { %1497 = shalt.err (!%p1494_p7)
}
  0x12   :  { %s1595_s25 = smov 256   ;;  %s1596_s26 = smov 16  }
  0x13   :  { %35 = dma.hbm_to_vmem [thread:$0]  %s2449_s1, 512, %s30_s16, [#allocation6], %s1595_s25, %s1595_s25, %s1596_s26  }
  0x14   :  { %s1597_s29 = smov [#allocation2]   ;;  %s1598_s5 = smov [#allocation7]  }
  0x15   :  { %s20_s30 = sshll.u32 %s1597_s29, 4  ;;  %s41_s6 = sshll.u32 %s1598_s5, 4  ;;  %s21_s30 = int_to_ptr.vmem [resolvable:$true] %s20_s30  ;;  %s42_s6 = int_to_ptr.vmem [resolvable:$true] %s41_s6 }
  0x16   :  { %s1498_s9 = scalar_lea.hbm %s2448_s0, 1024 }
  0x17   :  { %p1499_p8 = scmp.ne.s32.totalorder %s2448_s0, %s1498_s9  ;;  %p1502_p9 = scmp.lt.u32.totalorder %s1498_s9, %s2448_s0 }
  0x19   :  { %p1504_p10 = pnand %p1502_p9, %p1499_p8 }
  0x1b   :  { %1507 = shalt.err (!%p1504_p10)
}
  0x1c   :  { %s1508_s1 = scalar_lea.vmem %s21_s30, 1024  ;;  %p1513_p12 = scmp.lt.s32.totalorder %s21_s30, %s21_s30 }
  0x1d   :  { %p1509_p11 = scmp.ne.s32.totalorder %s21_s30, %s1508_s1  ;;  %p1514_p13 = scmp.lt.s32.totalorder %s1508_s1, %s1508_s1 }
  0x1f   :  { %p1515_p0 = por %p1514_p13, %p1513_p12 }
  0x21   :  { %p1516_p1 = pnand %p1515_p0, %p1509_p11 }
  0x23   :  { %1519 = shalt.err (!%p1516_p1)
}
  0x24   :  { %23 = dma.hbm_to_vmem [thread:$0]  %s2448_s0, 1024, %s21_s30, [#allocation3]  }
  0x25   :  { %s1520_s18 = scalar_lea.hbm %s2450_s2, 512 }
  0x26   :  { %p1521_p2 = scmp.ne.s32.totalorder %s2450_s2, %s1520_s18  ;;  %p1524_p3 = scmp.lt.u32.totalorder %s1520_s18, %s2450_s2 }
  0x28   :  { %p1526_p4 = pnand %p1524_p3, %p1521_p2 }
  0x2a   :  { %1529 = shalt.err (!%p1526_p4)
}
  0x2b   :  { %s1530_s23 = scalar_lea.vmem %s42_s6, 512  ;;  %p1535_p6 = scmp.lt.s32.totalorder %s42_s6, %s42_s6 }
  0x2c   :  { %p1531_p5 = scmp.ne.s32.totalorder %s42_s6, %s1530_s23  ;;  %p1536_p7 = scmp.lt.s32.totalorder %s1530_s23, %s1530_s23 }
  0x2e   :  { %p1537_p8 = por %p1536_p7, %p1535_p6 }
  0x30   :  { %p1538_p9 = pnand %p1537_p8, %p1531_p5 }
  0x32   :  { %1541 = shalt.err (!%p1538_p9)
}
  0x33   :  { %s1599_s0 = smov 128   ;;  %s1600_s24 = smov 8  }
  0x34   :  { %47 = dma.hbm_to_vmem [thread:$0]  %s2450_s2, 512, %s42_s6, [#allocation6], %s1599_s0, %s1599_s0, %s1600_s24  }
  0x35   :  { %1586 = dma.done.wait [#allocation3], 1024  }
  0x36   :  { %1587 = vsyncadd [#allocation3], 4294966272 }
  0x37   :  { %1588 = dma.done.wait [#allocation6], 1024  }
  0x38   :  { %1589 = vsyncadd [#allocation6], 4294966272  ;;  %v1601_v0 = vmov 0.0   ;;  %v1602_v1 = vmov 24   ;;  %v62_v2 = vld [vmem:[#allocation2 + $0x8] sm:$0xff]  ;;  %v1679_v3 = vld [vmem:[#allocation7] sm:$0xff] }
  0x39   :  { %162 = vmatprep.mubr.f32.mxu0 %v1601_v0  ;;  %174 = vmatprep.mubr.f32.mxu1 %v1601_v0  ;;  %v61_v4 = vld [vmem:[#allocation2] sm:$0xff]  ;;  %vm89_vm0 = vcmask 64512   ;;  %v1681_v5 = vld [vmem:[#allocation7 + $0x10] sm:$0xff]  ;;  %s1603_s2 = smov 120   ;;  %v64_v6 = vld [vmem:[#allocation2 + $0x18] sm:$0xff]  ;;  %v1604_v20 = vmov 25  }
  0x3a   :  { %1397 = vset.pattern.permute.xlu1 %v1602_v1  ;;  %1396 = vset.pattern.permute.xlu0 %v1602_v1  ;;  %v1686_v7 = vld [vmem:[#allocation7 + $0x8] sm:$0xff]  ;;  %v63_v8 = vld [vmem:[#allocation2 + $0x10] sm:$0xff]  ;;  %v1692_v9 = vld [vmem:[#allocation7 + $0x18] sm:$0xff]  ;;  %v1605_v21 = vmov 26   ;;  %v1606_v22 = vmov 27   ;;  %vm866_vm1 = vcmask 130048  }
  0x3b   :  { %98 = vmatprep.subr.mxu0 %v62_v2  ;;  %1375 = vmatprep.subr.mxu1 %v62_v2  ;;  %v66_v10 = vld [vmem:[#allocation2 + $0x28] sm:$0xff]  ;;  %v65_v11 = vld [vmem:[#allocation2 + $0x20] sm:$0xff]  ;;  %v68_v12 = vld [vmem:[#allocation2 + $0x38] sm:$0xff]  ;;  %s1607_s29 = smov 64   ;;  %vm964_vm2 = vcmask 523264   ;;  %s1610_s30 = smov [#allocation8]  }
  0x3c   :  { %858 = vrot.lane.b32.xlu0 %v1679_v3, %s1603_s2  ;;  %99 = vmatpush1.msra.mxu0 %v61_v4  ;;  %v839_v13 = vld [vmem:[#allocation5 + $0x8] sm:$0xff]  ;;  %v841_v14 = vld [vmem:[#allocation5 + $0x18] sm:$0xff]  ;;  %v67_v15 = vld [vmem:[#allocation2 + $0x30] sm:$0xff]  ;;  %s1322_s5 = sshll.u32 %s1610_s30, 4  ;;  %s1323_s5 = int_to_ptr.vmem [resolvable:$true] %s1322_s5 }
  0x3d   :  { %1376 = vmatpush1.msra.mxu1 %v61_v4  ;;  %1351 = vmatmul.mubr.msk.f32.vlgmr.msra.gmra.mrb[0].mxu0 %vm89_vm0, %v1679_v3  ;;  %v838_v16 = vld [vmem:[#allocation5] sm:$0xff]  ;;  %v840_v17 = vld [vmem:[#allocation5 + $0x10] sm:$0xff]  ;;  %v1371_v18 = vpack.c.bf16 %v841_v14, %v839_v13  ;;  %s1542_s6 = scalar_lea.vmem %s1323_s5, 4096  ;;  %p1547_p11 = scmp.lt.s32.totalorder %s1323_s5, %s1323_s5 }
  0x3e   :  { %1353 = vmatmul.mubr.msk.f32.vlgmr.msra.gmra.mrb[0].mxu1 %vm89_vm0, %v1681_v5  ;;  %168 = vmatprep.mubr.f32.mxu0 %v1601_v0  ;;  %v1373_v19 = vpack.c.bf16 %v840_v17, %v838_v16  ;;  %p1543_p10 = scmp.ne.s32.totalorder %s1323_s5, %s1542_s6  ;;  %p1548_p12 = scmp.lt.s32.totalorder %s1542_s6, %s1542_s6 }
  0x3f   :  { %180 = vmatprep.mubr.f32.mxu1 %v1601_v0  ;;  %187 = vmatprep.subr.mxu1 %v64_v6 }
  0x40   :  { %860 = vrot.lane.b32.xlu0 %v1686_v7, %s1603_s2  ;;  %862 = vrot.lane.b32.xlu1 %v1681_v5, %s1603_s2  ;;  %p1549_p13 = por %p1548_p12, %p1547_p11 }
  0x41   :  { %1352 = vmatmul.mubr.msk.f32.gmra.mrb[2].mxu0 %vm89_vm0, %v1686_v7  ;;  %188 = vmatpush1.msra.mxu1 %v63_v8 }
  0x42   :  { %1354 = vmatmul.mubr.msk.f32.gmra.mrb[2].mxu1 %vm89_vm0, %v1692_v9  ;;  %276 = vmatprep.subr.mxu0 %v66_v10  ;;  %p1550_p0 = pnand %p1549_p13, %p1543_p10 }
  0x43   :  { %251 = vmatprep.mubr.f32.mxu1 %v1601_v0  ;;  %277 = vmatpush1.msra.mxu0 %v65_v11 }
  0x44   :  { %864 = vrot.lane.b32.xlu1 %v1692_v9, %s1603_s2  ;;  %340 = vmatprep.mubr.f32.mxu0 %v1601_v0 }
  0x45   :  { %1359 = vmatmul.mubr.msk.f32.vlgmr.msra.gmra.mrb[4].mxu0 %vm89_vm0, %v1679_v3  ;;  %365 = vmatprep.subr.mxu1 %v68_v12 }
  0x46   :  { %1355 = vmatmul.mubr.msk.f32.vlgmr.msra.gmra.mrb[4].mxu1 %vm89_vm0, %v1679_v3  ;;  %346 = vmatprep.mubr.f32.mxu0 %v1601_v0 }
  0x47   :  { %257 = vmatprep.mubr.f32.mxu1 %v1601_v0  ;;  %366 = vmatpush1.msra.mxu1 %v67_v15 }
  0x48   :  { %76 = vperm.xlu1 %1397, %v1686_v7   ;;  %71 = vperm.xlu0 %1396, %v1679_v3  }
  0x49   :  { %1360 = vmatmul.mubr.msk.f32.gmra.mrb[6].mxu0 %vm89_vm0, %v1686_v7  ;;  %1372 = vmatprep.subr.bf16.mxu0 %v1371_v18 }
  0x4a   :  { %1356 = vmatmul.mubr.msk.f32.gmra.mrb[6].mxu1 %vm89_vm0, %v1686_v7  ;;  %352 = vmatprep.mubr.f32.mxu0 %v1601_v0 }
  0x4b   :  { %263 = vmatprep.mubr.f32.mxu1 %v1601_v0  ;;  %1374 = vmatpush1.bf16.msra.mxu0 %v1373_v19 }
  0x4c   :  { %81 = vperm.xlu1 %1397, %v1681_v5   ;;  %86 = vperm.xlu0 %1396, %v1692_v9  }
  0x4d   :  { %1361 = vmatmul.mubr.msk.f32.gmra.mrb[8].mxu0 %vm89_vm0, %v1681_v5 }
  0x4e   :  { %1357 = vmatmul.mubr.msk.f32.gmra.mrb[8].mxu1 %vm89_vm0, %v1681_v5  ;;  %358 = vmatprep.mubr.f32.mxu0 %v1601_v0 }
  0x4f   :  { %269 = vmatprep.mubr.f32.mxu1 %v1601_v0 }
  0x50   :  { %1399 = vset.pattern.permute.xlu1 %v1604_v20  ;;  %1398 = vset.pattern.permute.xlu0 %v1604_v20 }
  0x51   :  { %1362 = vmatmul.mubr.msk.f32.gmra.mrb[10].mxu0 %vm89_vm0, %v1692_v9  ;;  %523 = vperm.xlu1 %1399, %v1686_v7  }
  0x52   :  { %1358 = vmatmul.mubr.msk.f32.gmra.mrb[10].mxu1 %vm89_vm0, %v1692_v9  ;;  %939 = vmatprep.mubr.f32.mxu0 %v1601_v0 }
  0x53   :  { %429 = vmatprep.mubr.f32.mxu1 %v1601_v0  ;;  %519 = vperm.xlu0 %1398, %v1679_v3  }
  0x55   :  { %527 = vperm.xlu1 %1399, %v1681_v5  }
  0x56   :  { %1363 = vmatmul.mubr.msk.f32.vlgmr.msra.gmra.mrb[12].mxu1 %vm89_vm0, %v1679_v3 }
  0x57   :  { %435 = vmatprep.mubr.f32.mxu1 %v1601_v0  ;;  %1403 = vset.pattern.permute.xlu0 %v1605_v21 }
  0x58   :  { %547 = vperm.xlu0 %1403, %v1686_v7  }
  0x59   :  { %1400 = vset.pattern.permute.xlu1 %v1606_v22 }
  0x5a   :  { %1364 = vmatmul.mubr.msk.f32.gmra.mrb[14].mxu1 %vm89_vm0, %v1686_v7  ;;  %843 = vperm.xlu1 %1400, %v1679_v3  }
  0x5b   :  { %441 = vmatprep.mubr.f32.mxu1 %v1601_v0 }
  0x5e   :  { %1365 = vmatmul.mubr.msk.f32.gmra.mrb[16].mxu1 %vm89_vm0, %v1681_v5  ;;  %847 = vperm.xlu1 %1400, %v1686_v7  }
  0x5f   :  { %447 = vmatprep.mubr.f32.mxu1 %v1601_v0 }
  0x62   :  { %1366 = vmatmul.mubr.msk.f32.gmra.mrb[18].mxu1 %vm89_vm0, %v1692_v9  ;;  %851 = vperm.xlu1 %1400, %v1681_v5  }
  0x66   :  { %855 = vperm.xlu1 %1400, %v1692_v9  }
  0x6a   :  { %1401 = vset.pattern.permute.xlu1 %v1604_v20 }
  0x6b   :  { %531 = vperm.xlu1 %1401, %v1692_v9  }
  0x6f   :  { %1402 = vset.pattern.permute.xlu1 %v1605_v21 }
  0x70   :  { %543 = vperm.xlu1 %1402, %v1679_v3  }
  0x74   :  { %551 = vperm.xlu1 %1402, %v1681_v5  }
  0x78   :  { %555 = vperm.xlu1 %1402, %v1692_v9  }
  0xae   :  { %v859_v23 = vpop.permute.xlu0 %858 }
  0xaf   :  { %1367 = vmatmul.mubr.msk.f32.vlgmr.msra.gmra.mrb[12].mxu0 %vm866_vm1, %v859_v23 }
  0xb0   :  { %945 = vmatprep.mubr.f32.mxu0 %v1601_v0 }
  0xb2   :  { %v861_v24 = vpop.permute.xlu0 %860  ;;  %v863_v25 = vpop.permute.xlu1 %862 }
  0xb3   :  { %1368 = vmatmul.mubr.msk.f32.gmra.mrb[14].mxu0 %vm866_vm1, %v861_v24 }
  0xb4   :  { %951 = vmatprep.mubr.f32.mxu0 %v1601_v0 }
  0xb6   :  { %v865_v26 = vpop.permute.xlu1 %864 }
  0xb7   :  { %1369 = vmatmul.mubr.msk.f32.gmra.mrb[16].mxu0 %vm866_vm1, %v863_v25 }
  0xb8   :  { %957 = vmatprep.mubr.f32.mxu0 %v1601_v0 }
  0xbb   :  { %1370 = vmatmul.mubr.msk.f32.gmra.mrb[18].mxu0 %vm866_vm1, %v865_v26 }
  0xc7   :  { %v1757_v27 = vpop.permute.xlu1 %76  ;;  %v1759_v28 = vpop.permute.xlu0 %71 }
  0xcb   :  { %v1761_v29 = vpop.permute.xlu1 %81  ;;  %v1772_v37 = vpop.permute.xlu0 %86 }
 0x110   :  { %v164_v30 = vpop.f32.mrb[0].mxu0 }
 0x111   :  { %v176_v31 = vpop.f32.mrb[0].mxu1  ;;  %v166_v32 = vpop.f32.mrb[1].mxu0  ;;  %v1764_v33 = vadd.f32 %v164_v30, %v1759_v28 }
 0x112   :  { %v178_v34 = vpop.f32.mrb[1].mxu1  ;;  %v1767_v35 = vadd.f32 %v166_v32, %v1759_v28  ;;  %v1770_v36 = vadd.f32 %v176_v31, %v1761_v29 }
 0x113   :  { %v1775_v38 = vadd.f32 %v178_v34, %v1761_v29 }
 0x114   :  { %v170_v39 = vpop.f32.mrb[2].mxu0  ;;  %v454_v40 = vadd.f32 %v1767_v35, %v1764_v33 }
 0x115   :  { %v1780_v41 = vadd.f32 %v170_v39, %v1757_v27  ;;  %v182_v42 = vpop.f32.mrb[2].mxu1  ;;  %v172_v43 = vpop.f32.mrb[3].mxu0  ;;  %v460_v44 = vadd.f32 %v1775_v38, %v1770_v36 }
 0x116   :  { %v184_v45 = vpop.f32.mrb[3].mxu1  ;;  %v1785_v46 = vadd.f32 %v172_v43, %v1757_v27  ;;  %455 = vadd.xlane.f32.xlu1 %v454_v40  ;;  %v1788_v47 = vadd.f32 %v182_v42, %v1772_v37 }
 0x117   :  { %461 = vadd.xlane.f32.xlu0 %v460_v44  ;;  %v1791_v48 = vadd.f32 %v184_v45, %v1772_v37 }
 0x118   :  { %v457_v49 = vadd.f32 %v1785_v46, %v1780_v41  ;;  %v342_v50 = vpop.f32.mrb[4].mxu0 }
 0x119   :  { %v253_v51 = vpop.f32.mrb[4].mxu1  ;;  %v463_v52 = vadd.f32 %v1791_v48, %v1788_v47  ;;  %v344_v53 = vpop.f32.mrb[5].mxu0  ;;  %v1804_v57 = vadd.f32 %v342_v50, %v1759_v28 }
 0x11a   :  { %v1798_v54 = vadd.f32 %v253_v51, %v1759_v28  ;;  %v255_v55 = vpop.f32.mrb[5].mxu1  ;;  %v1807_v58 = vadd.f32 %v344_v53, %v1759_v28 }
 0x11b   :  { %v1801_v56 = vadd.f32 %v255_v55, %v1759_v28  ;;  %458 = vadd.xlane.f32.xlu0 %v457_v49  ;;  %464 = vadd.xlane.f32.xlu1 %v463_v52 }
 0x11c   :  { %v348_v59 = vpop.f32.mrb[6].mxu0  ;;  %v646_v5 = vadd.f32 %v1807_v58, %v1804_v57 }
 0x11d   :  { %v259_v60 = vpop.f32.mrb[6].mxu1  ;;  %v566_v61 = vadd.f32 %v1801_v56, %v1798_v54  ;;  %v350_v62 = vpop.f32.mrb[7].mxu0  ;;  %v1815_v1 = vadd.f32 %v348_v59, %v1757_v27 }
 0x11e   :  { %v1812_v63 = vadd.f32 %v259_v60, %v1757_v27  ;;  %v261_v0 = vpop.f32.mrb[7].mxu1  ;;  %v1818_v2 = vadd.f32 %v350_v62, %v1757_v27 }
 0x11f   :  { %v1821_v4 = vadd.f32 %v261_v0, %v1757_v27  ;;  %567 = vadd.xlane.f32.xlu0 %v566_v61  ;;  %v1891_v61 = vpop.permute.xlu1 %523 }
 0x120   :  { %v354_v6 = vpop.f32.mrb[8].mxu0  ;;  %v649_v12 = vadd.f32 %v1818_v2, %v1815_v1 }
 0x121   :  { %v265_v7 = vpop.f32.mrb[8].mxu1  ;;  %v569_v8 = vadd.f32 %v1821_v4, %v1812_v63  ;;  %v356_v9 = vpop.f32.mrb[9].mxu0  ;;  %v1836_v14 = vadd.f32 %v354_v6, %v1761_v29 }
 0x122   :  { %v1828_v10 = vadd.f32 %v265_v7, %v1761_v29  ;;  %v267_v11 = vpop.f32.mrb[9].mxu1  ;;  %v1839_v15 = vadd.f32 %v356_v9, %v1761_v29 }
 0x123   :  { %v1833_v13 = vadd.f32 %v267_v11, %v1761_v29  ;;  %647 = vadd.xlane.f32.xlu0 %v646_v5  ;;  %570 = vadd.xlane.f32.xlu1 %v569_v8 }
 0x124   :  { %v360_v16 = vpop.f32.mrb[10].mxu0  ;;  %v652_v23 = vadd.f32 %v1839_v15, %v1836_v14 }
 0x125   :  { %v271_v17 = vpop.f32.mrb[10].mxu1  ;;  %v572_v18 = vadd.f32 %v1833_v13, %v1828_v10  ;;  %v362_v19 = vpop.f32.mrb[11].mxu0  ;;  %v1858_v31 = vadd.f32 %v360_v16, %v1772_v37 }
 0x126   :  { %v273_v20 = vpop.f32.mrb[11].mxu1  ;;  %v1844_v21 = vadd.f32 %v271_v17, %v1772_v37  ;;  %v1861_v32 = vadd.f32 %v362_v19, %v1772_v37 }
 0x127   :  { %573 = vadd.xlane.f32.xlu0 %v572_v18  ;;  %650 = vadd.xlane.f32.xlu1 %v649_v12  ;;  %v1847_v22 = vadd.f32 %v273_v20, %v1772_v37 }
 0x128   :  { %v655_v44 = vadd.f32 %v1861_v32, %v1858_v31 }
 0x129   :  { %v431_v24 = vpop.f32.mrb[12].mxu1  ;;  %v575_v34 = vadd.f32 %v1847_v22, %v1844_v21 }
 0x12a   :  { %v1852_v25 = vadd.f32 %v431_v24, %v1759_v28  ;;  %v433_v26 = vpop.f32.mrb[13].mxu1 }
 0x12b   :  { %v1855_v30 = vadd.f32 %v433_v26, %v1759_v28  ;;  %653 = vadd.xlane.f32.xlu0 %v652_v23 }
 0x12d   :  { %v437_v39 = vpop.f32.mrb[14].mxu1  ;;  %v726_v40 = vadd.f32 %v1855_v30, %v1852_v25 }
 0x12e   :  { %v439_v42 = vpop.f32.mrb[15].mxu1  ;;  %v1868_v43 = vadd.f32 %v437_v39, %v1757_v27 }
 0x12f   :  { %576 = vadd.xlane.f32.xlu0 %v575_v34  ;;  %727 = vadd.xlane.f32.xlu1 %v726_v40  ;;  %v1871_v28 = vadd.f32 %v439_v42, %v1757_v27 }
 0x131   :  { %v443_v45 = vpop.f32.mrb[16].mxu1  ;;  %v729_v52 = vadd.f32 %v1871_v28, %v1868_v43 }
 0x132   :  { %v1876_v49 = vadd.f32 %v443_v45, %v1761_v29  ;;  %v445_v50 = vpop.f32.mrb[17].mxu1  ;;  %v1933_v45 = vpop.permute.xlu0 %519 }
 0x133   :  { %v1879_v51 = vadd.f32 %v445_v50, %v1761_v29  ;;  %656 = vadd.xlane.f32.xlu0 %v655_v44  ;;  %v1893_v29 = vpop.permute.xlu1 %527 }
 0x135   :  { %v732_v53 = vadd.f32 %v1879_v51, %v1876_v49  ;;  %v449_v27 = vpop.f32.mrb[18].mxu1 }
 0x136   :  { %v1886_v55 = vadd.f32 %v449_v27, %v1772_v37  ;;  %v451_v59 = vpop.f32.mrb[19].mxu1 }
 0x137   :  { %730 = vadd.xlane.f32.xlu0 %v729_v52  ;;  %733 = vadd.xlane.f32.xlu1 %v732_v53  ;;  %v1889_v60 = vadd.f32 %v451_v59, %v1772_v37  ;;  %v844_v62 = vpop.permute.xlu1 %843  ;;  %v1937_v52 = vpop.permute.xlu0 %547 }
 0x13b   :  { %v848_v0 = vpop.permute.xlu1 %847 }
 0x13f   :  { %v852_v5 = vpop.permute.xlu1 %851 }
 0x143   :  { %v856_v37 = vpop.permute.xlu1 %855 }
 0x147   :  { %v1913_v23 = vpop.permute.xlu1 %531 }
 0x14b   :  { %v1923_v40 = vpop.permute.xlu1 %543 }
 0x14f   :  { %v1931_v44 = vpop.permute.xlu1 %551 }
 0x153   :  { %v1935_v50 = vpop.permute.xlu1 %555 }
 0x182   :  { %v941_v6 = vpop.f32.mrb[12].mxu0 }
 0x183   :  { %v1895_v7 = vadd.f32 %v941_v6, %v844_v62  ;;  %v943_v8 = vpop.f32.mrb[13].mxu0 }
 0x184   :  { %v1897_v9 = vadd.f32 %v943_v8, %v844_v62 }
 0x185   :  { %1061 = vrot.lane.b32.xlu1 %v1895_v7, %s1607_s29 }
 0x186   :  { %2461 = vst [vmem:[#allocation15_spill] sm:$0xff] %v1897_v9  ;;  %v947_v11 = vpop.f32.mrb[14].mxu0  ;;  %1213 = vrot.lane.b32.xlu0 %v1897_v9, %s1607_s29 }
 0x187   :  { %v1903_v12 = vadd.f32 %v947_v11, %v848_v0  ;;  %v949_v16 = vpop.f32.mrb[15].mxu0 }
 0x188   :  { %v1905_v17 = vadd.f32 %v949_v16, %v848_v0 }
 0x18a   :  { %2462 = vst [vmem:[#allocation16_spill] sm:$0xff] %v1905_v17  ;;  %v953_v18 = vpop.f32.mrb[16].mxu0  ;;  %1063 = vrot.lane.b32.xlu0 %v1903_v12, %s1607_s29  ;;  %1215 = vrot.lane.b32.xlu1 %v1905_v17, %s1607_s29 }
 0x18b   :  { %v1911_v19 = vadd.f32 %v953_v18, %v852_v5  ;;  %v955_v20 = vpop.f32.mrb[17].mxu0 }
 0x18c   :  { %v1915_v24 = vadd.f32 %v955_v20, %v852_v5 }
 0x18e   :  { %2463 = vst [vmem:[#allocation17_spill] sm:$0xff] %v1915_v24  ;;  %v959_v26 = vpop.f32.mrb[18].mxu0  ;;  %1217 = vrot.lane.b32.xlu0 %v1915_v24, %s1607_s29  ;;  %1065 = vrot.lane.b32.xlu1 %v1911_v19, %s1607_s29 }
 0x18f   :  { %v1921_v34 = vadd.f32 %v959_v26, %v856_v37  ;;  %v961_v39 = vpop.f32.mrb[19].mxu0 }
 0x190   :  { %v1927_v42 = vadd.f32 %v961_v39, %v856_v37 }
 0x192   :  { %1067 = vrot.lane.b32.xlu1 %v1921_v34, %s1607_s29  ;;  %2464 = vst [vmem:[#allocation18_spill] sm:$0xff] %v1927_v42 }
 0x196   :  { %1219 = vrot.lane.b32.xlu1 %v1927_v42, %s1607_s29 }
 0x1a3   :  { %v456_v53 = vpop.xlane.xlu1 %455 }
 0x1a4   :  { %v462_v27 = vpop.xlane.xlu0 %461  ;;  %v466_v59 = vmul.f32 0.00390625, %v456_v53 }
 0x1a5   :  { %v468_v62 = vmul.f32 0.00390625, %v462_v27 }
 0x1a6   :  { %v1940_v0 = vsub.f32 %v1764_v33, %v466_v59  ;;  %v1943_v5 = vsub.f32 %v1767_v35, %v466_v59 }
 0x1a7   :  { %v1946_v6 = vsub.f32 %v1770_v36, %v468_v62  ;;  %v1949_v8 = vsub.f32 %v1775_v38, %v468_v62 }
 0x1a8   :  { %v459_v11 = vpop.xlane.xlu0 %458  ;;  %v478_v37 = vmul.f32 %v1940_v0, %v1940_v0  ;;  %v479_v16 = vmul.f32 %v1943_v5, %v1943_v5  ;;  %v465_v20 = vpop.xlane.xlu1 %464 }
 0x1a9   :  { %v482_v33 = vmul.f32 %v1946_v6, %v1946_v6  ;;  %v483_v35 = vmul.f32 %v1949_v8, %v1949_v8  ;;  %v467_v36 = vmul.f32 0.00390625, %v459_v11  ;;  %v469_v38 = vmul.f32 0.00390625, %v465_v20 }
 0x1aa   :  { %v486_v18 = vadd.f32 %v479_v16, %v478_v37 }
 0x1ab   :  { %v492_v39 = vadd.f32 %v483_v35, %v482_v33  ;;  %v1960_v53 = vsub.f32 %v1780_v41, %v467_v36  ;;  %v1963_v27 = vsub.f32 %v1785_v46, %v467_v36  ;;  %v1966_v16 = vsub.f32 %v1788_v47, %v469_v38 }
 0x1ac   :  { %v568_v26 = vpop.xlane.xlu0 %567  ;;  %v1969_v42 = vsub.f32 %v1791_v48, %v469_v38 }
 0x1ad   :  { %487 = vadd.xlane.f32.xlu0 %v486_v18  ;;  %v578_v41 = vmul.f32 0.00390625, %v568_v26  ;;  %v480_v33 = vmul.f32 %v1960_v53, %v1960_v53  ;;  %v481_v35 = vmul.f32 %v1963_v27, %v1963_v27 }
 0x1af   :  { %v489_v17 = vadd.f32 %v481_v35, %v480_v33 }
 0x1b0   :  { %v648_v59 = vpop.xlane.xlu0 %647  ;;  %v571_v62 = vpop.xlane.xlu1 %570 }
 0x1b1   :  { %v579_v37 = vmul.f32 0.00390625, %v571_v62  ;;  %493 = vadd.xlane.f32.xlu0 %v492_v39  ;;  %v658_v36 = vmul.f32 0.00390625, %v648_v59  ;;  %v485_v39 = vmul.f32 %v1969_v42, %v1969_v42  ;;  %v1996_v62 = vsub.f32 %v1798_v54, %v578_v41 }
 0x1b3   :  { %v1972_v11 = vsub.f32 %v1812_v63, %v579_v37  ;;  %v1975_v18 = vsub.f32 %v1821_v4, %v579_v37  ;;  %v484_v4 = vmul.f32 %v1966_v16, %v1966_v16  ;;  %v1999_v37 = vsub.f32 %v1801_v56, %v578_v41 }
 0x1b4   :  { %v574_v20 = vpop.xlane.xlu0 %573  ;;  %v651_v46 = vpop.xlane.xlu1 %650  ;;  %v2009_v54 = vsub.f32 %v1807_v58, %v658_v36  ;;  %v590_v33 = vmul.f32 %v1996_v62, %v1996_v62 }
 0x1b5   :  { %v659_v47 = vmul.f32 0.00390625, %v651_v46  ;;  %v592_v48 = vmul.f32 %v1972_v11, %v1972_v11  ;;  %v593_v63 = vmul.f32 %v1975_v18, %v1975_v18  ;;  %v580_v56 = vmul.f32 0.00390625, %v574_v20 }
 0x1b6   :  { %v495_v9 = vadd.f32 %v485_v39, %v484_v4  ;;  %v591_v35 = vmul.f32 %v1999_v37, %v1999_v37 }
 0x1b7   :  { %v1988_v26 = vsub.f32 %v1815_v1, %v659_v47  ;;  %v1991_v38 = vsub.f32 %v1818_v2, %v659_v47  ;;  %v601_v24 = vadd.f32 %v593_v63, %v592_v48  ;;  %v2006_v2 = vsub.f32 %v1804_v57, %v658_v36 }
 0x1b8   :  { %v654_v46 = vpop.xlane.xlu0 %653  ;;  %v2026_v20 = vsub.f32 %v1828_v10, %v580_v56  ;;  %v2029_v63 = vsub.f32 %v1833_v13, %v580_v56  ;;  %v598_v36 = vadd.f32 %v591_v35, %v590_v33 }
 0x1b9   :  { %v672_v59 = vmul.f32 %v1988_v26, %v1988_v26  ;;  %v673_v1 = vmul.f32 %v1991_v38, %v1991_v38  ;;  %602 = vadd.xlane.f32.xlu0 %v601_v24  ;;  %v670_v58 = vmul.f32 %v2006_v2, %v2006_v2  ;;  %v671_v24 = vmul.f32 %v2009_v54, %v2009_v54 }
 0x1ba   :  { %490 = vadd.xlane.f32.xlu1 %v489_v17  ;;  %v660_v4 = vmul.f32 0.00390625, %v654_v46  ;;  %v594_v56 = vmul.f32 %v2026_v20, %v2026_v20 }
 0x1bb   :  { %v681_v47 = vadd.f32 %v673_v1, %v672_v59  ;;  %v678_v13 = vadd.f32 %v671_v24, %v670_v58 }
 0x1bc   :  { %v577_v41 = vpop.xlane.xlu0 %576  ;;  %v2042_v46 = vsub.f32 %v1836_v14, %v660_v4  ;;  %v728_v58 = vpop.xlane.xlu1 %727 }
 0x1bd   :  { %v581_v48 = vmul.f32 0.00390625, %v577_v41  ;;  %682 = vadd.xlane.f32.xlu0 %v681_v47  ;;  %v2045_v47 = vsub.f32 %v1839_v15, %v660_v4  ;;  %v595_v41 = vmul.f32 %v2029_v63, %v2029_v63 }
 0x1be   :  { %496 = vadd.xlane.f32.xlu1 %v495_v9  ;;  %v674_v15 = vmul.f32 %v2042_v46, %v2042_v46 }
 0x1bf   :  { %v2016_v17 = vsub.f32 %v1844_v21, %v581_v48  ;;  %v2019_v57 = vsub.f32 %v1847_v22, %v581_v48  ;;  %v604_v14 = vadd.f32 %v595_v41, %v594_v56  ;;  %v675_v35 = vmul.f32 %v2045_v47, %v2045_v47 }
 0x1c0   :  { %v657_v9 = vpop.xlane.xlu0 %656 }
 0x1c1   :  { %v661_v21 = vmul.f32 0.00390625, %v657_v9  ;;  %v596_v22 = vmul.f32 %v2016_v17, %v2016_v17  ;;  %v597_v39 = vmul.f32 %v2019_v57, %v2019_v57  ;;  %v684_v48 = vadd.f32 %v675_v35, %v674_v15 }
 0x1c2   :  { %599 = vadd.xlane.f32.xlu1 %v598_v36  ;;  %v1608_v9 = vmov 28  }
 0x1c3   :  { %v2036_v59 = vsub.f32 %v1858_v31, %v661_v21  ;;  %v2039_v10 = vsub.f32 %v1861_v32, %v661_v21  ;;  %v607_v1 = vadd.f32 %v597_v39, %v596_v22  ;;  %1404 = vset.pattern.permute.xlu1 %v1608_v9  ;;  %1405 = vset.pattern.permute.xlu0 %v1608_v9  ;;  %v738_v39 = vmul.f32 0.00390625, %v728_v58 }
 0x1c4   :  { %v734_v24 = vpop.xlane.xlu1 %733  ;;  %v731_v4 = vpop.xlane.xlu0 %730 }
 0x1c5   :  { %608 = vadd.xlane.f32.xlu0 %v607_v1  ;;  %v676_v31 = vmul.f32 %v2036_v59, %v2036_v59  ;;  %v677_v32 = vmul.f32 %v2039_v10, %v2039_v10 }
 0x1c6   :  { %679 = vadd.xlane.f32.xlu1 %v678_v13 }
 0x1c7   :  { %v687_v33 = vadd.f32 %v677_v32, %v676_v31  ;;  %v2063_v31 = vsub.f32 %v1852_v25, %v738_v39  ;;  %v2066_v32 = vsub.f32 %v1855_v30, %v738_v39  ;;  %v739_v25 = vmul.f32 0.00390625, %v731_v4 }
 0x1c9   :  { %688 = vadd.xlane.f32.xlu0 %v687_v33  ;;  %v740_v33 = vmul.f32 0.00390625, %v734_v24  ;;  %v750_v58 = vmul.f32 %v2063_v31, %v2063_v31  ;;  %v751_v9 = vmul.f32 %v2066_v32, %v2066_v32 }
 0x1ca   :  { %605 = vadd.xlane.f32.xlu1 %v604_v14 }
 0x1cb   :  { %v2078_v30 = vsub.f32 %v1879_v51, %v740_v33  ;;  %v758_v39 = vadd.f32 %v751_v9, %v750_v58 }
 0x1cd   :  { %v755_v51 = vmul.f32 %v2078_v30, %v2078_v30 }
 0x1ce   :  { %685 = vadd.xlane.f32.xlu1 %v684_v48 }
 0x1f7   :  { %v1062_v36 = vpop.permute.xlu1 %1061 }
 0x1f8   :  { %v1214_v21 = vpop.permute.xlu0 %1213  ;;  %v1073_v22 = vsel %vm964_vm2, %v1062_v36, 0.0  ;;  %v2075_v36 = vsub.f32 %v1876_v49, %v740_v33  ;;  %v735_v33 = vadd.f32 %v1889_v60, %v1886_v55 }
 0x1f9   :  { %1074 = vadd.xlane.f32.xlu1 %v1073_v22  ;;  %v1225_v56 = vsel %vm964_vm2, %v1214_v21, 0.0 }
 0x1fa   :  { %v754_v49 = vmul.f32 %v2075_v36, %v2075_v36 }
 0x1fc   :  { %v1064_v1 = vpop.permute.xlu0 %1063  ;;  %v1216_v13 = vpop.permute.xlu1 %1215 }
 0x1fd   :  { %1226 = vadd.xlane.f32.xlu1 %v1225_v56  ;;  %v1076_v41 = vsel %vm964_vm2, %v1064_v1, 0.0  ;;  %v1228_v15 = vsel %vm964_vm2, %v1216_v13, 0.0  ;;  %v2083_v1 = vsub.f32 %v1868_v43, %v739_v25  ;;  %v2086_v13 = vsub.f32 %v1871_v28, %v739_v25 }
 0x1fe   :  { %1077 = vadd.xlane.f32.xlu0 %v1076_v41  ;;  %v764_v41 = vadd.f32 %v755_v51, %v754_v49 }
 0x1ff   :  { %v752_v43 = vmul.f32 %v2083_v1, %v2083_v1  ;;  %v753_v28 = vmul.f32 %v2086_v13, %v2086_v13 }
 0x200   :  { %v1066_v14 = vpop.permute.xlu1 %1065  ;;  %v1218_v48 = vpop.permute.xlu0 %1217 }
 0x201   :  { %v1079_v35 = vsel %vm964_vm2, %v1066_v14, 0.0  ;;  %v1231_v21 = vsel %vm964_vm2, %v1218_v48, 0.0  ;;  %v761_v14 = vadd.f32 %v753_v28, %v752_v43 }
 0x202   :  { %1229 = vadd.xlane.f32.xlu0 %v1228_v15  ;;  %1080 = vadd.xlane.f32.xlu1 %v1079_v35  ;;  %v965_v15 = vsel %vm964_vm2, %v1895_v7, 0.0  ;;  %v971_v35 = vsel %vm964_vm2, %v1911_v19, 0.0 }
 0x204   :  { %v1068_v24 = vpop.permute.xlu1 %1067 }
 0x205   :  { %v1082_v22 = vsel %vm964_vm2, %v1068_v24, 0.0 }
 0x206   :  { %1232 = vadd.xlane.f32.xlu1 %v1231_v21  ;;  %1083 = vadd.xlane.f32.xlu0 %v1082_v22 }
 0x208   :  { %v1220_v4 = vpop.permute.xlu1 %1219 }
 0x209   :  { %v1234_v56 = vsel %vm964_vm2, %v1220_v4, 0.0 }
 0x20a   :  { %759 = vadd.xlane.f32.xlu1 %v758_v39  ;;  %1235 = vadd.xlane.f32.xlu0 %v1234_v56 }
 0x20e   :  { %765 = vadd.xlane.f32.xlu1 %v764_v41  ;;  %736 = vadd.xlane.f32.xlu0 %v735_v33 }
 0x212   :  { %966 = vadd.xlane.f32.xlu1 %v965_v15  ;;  %762 = vadd.xlane.f32.xlu0 %v761_v14 }
 0x216   :  { %972 = vadd.xlane.f32.xlu1 %v971_v35 }
 0x227   :  { %1018 = vperm.xlu1 %1404, %v1679_v3  }
 0x23a   :  { %v488_v48 = vpop.xlane.xlu0 %487 }
 0x23b   :  { %v498_v58 = vmul.f32 0.00390625, %v488_v48 }
 0x23d   :  { %v502_v9 = vadd.f32 1e-05, %v498_v58 }
 0x23e   :  { %v494_v25 = vpop.xlane.xlu0 %493 }
 0x23f   :  { %1408 = vrsqrt.f32 %v502_v9  ;;  %v500_v24 = vmul.f32 0.00390625, %v494_v25 }
 0x241   :  { %v504_v21 = vadd.f32 1e-05, %v500_v24 }
 0x243   :  { %1410 = vrsqrt.f32 %v504_v21 }
 0x246   :  { %v603_v22 = vpop.xlane.xlu0 %602 }
 0x247   :  { %v491_v39 = vpop.xlane.xlu1 %490  ;;  %v611_v4 = vmul.f32 0.00390625, %v603_v22 }
 0x248   :  { %v499_v49 = vmul.f32 0.00390625, %v491_v39 }
 0x249   :  { %v1409_v51 = vpop.eup %1408  ;;  %v615_v33 = vadd.f32 1e-05, %v611_v4 }
 0x24a   :  { %v510_v56 = vmul.f32 %v1409_v51, %v1940_v0  ;;  %v511_v41 = vmul.f32 %v1409_v51, %v1943_v5  ;;  %v503_v43 = vadd.f32 1e-05, %v499_v49  ;;  %v683_v3 = vpop.xlane.xlu0 %682 }
 0x24b   :  { %v497_v28 = vpop.xlane.xlu1 %496  ;;  %1412 = vrsqrt.f32 %v615_v33  ;;  %v691_v35 = vmul.f32 0.00390625, %v683_v3 }
 0x24c   :  { %v534_v14 = vmul.f32 %v1933_v45, %v510_v56  ;;  %v535_v15 = vmul.f32 %v1933_v45, %v511_v41  ;;  %1414 = vrsqrt.f32 %v503_v43  ;;  %v501_v58 = vmul.f32 0.00390625, %v497_v28 }
 0x24d   :  { %v1411_v48 = vpop.eup %1410  ;;  %v695_v24 = vadd.f32 1e-05, %v691_v35 }
 0x24e   :  { %v558_v9 = vadd.f32 %v1923_v40, %v534_v14  ;;  %v559_v25 = vadd.f32 %v1923_v40, %v535_v15  ;;  %v514_v0 = vmul.f32 %v1411_v48, %v1946_v6  ;;  %v515_v5 = vmul.f32 %v1411_v48, %v1949_v8 }
 0x24f   :  { %v505_v21 = vadd.f32 1e-05, %v501_v58  ;;  %v600_v22 = vpop.xlane.xlu1 %599  ;;  %1416 = vrsqrt.f32 %v695_v24 }
 0x250   :  { %806 = vst [vmem:[#allocation8] sm:$0xff] %v558_v9  ;;  %807 = vst [vmem:[#allocation8 + $0x8] sm:$0xff] %v559_v25  ;;  %v538_v39 = vmul.f32 %v1893_v29, %v514_v0  ;;  %v539_v4 = vmul.f32 %v1893_v29, %v515_v5  ;;  %v610_v49 = vmul.f32 0.00390625, %v600_v22 }
 0x251   :  { %1418 = vrsqrt.f32 %v505_v21 }
 0x252   :  { %v562_v51 = vadd.f32 %v1931_v44, %v538_v39  ;;  %v563_v56 = vadd.f32 %v1931_v44, %v539_v4  ;;  %v614_v41 = vadd.f32 1e-05, %v610_v49  ;;  %v609_v6 = vpop.xlane.xlu0 %608 }
 0x253   :  { %v613_v33 = vmul.f32 0.00390625, %v609_v6  ;;  %v680_v8 = vpop.xlane.xlu1 %679 }
 0x254   :  { %822 = vst [vmem:[#allocation8 + $0x80] sm:$0xff] %v562_v51  ;;  %823 = vst [vmem:[#allocation8 + $0x88] sm:$0xff] %v563_v56  ;;  %1420 = vrsqrt.f32 %v614_v41  ;;  %v690_v43 = vmul.f32 0.00390625, %v680_v8 }
 0x255   :  { %v617_v3 = vadd.f32 1e-05, %v613_v33  ;;  %v1413_v28 = vpop.eup %1412 }
 0x256   :  { %v694_v14 = vadd.f32 1e-05, %v690_v43  ;;  %v1415_v15 = vpop.eup %1414  ;;  %v624_v35 = vmul.f32 %v1413_v28, %v1972_v11  ;;  %v625_v48 = vmul.f32 %v1413_v28, %v1975_v18  ;;  %v689_v58 = vpop.xlane.xlu0 %688 }
 0x257   :  { %1422 = vrsqrt.f32 %v617_v3  ;;  %v606_v9 = vpop.xlane.xlu1 %605  ;;  %v512_v25 = vmul.f32 %v1415_v15, %v1960_v53  ;;  %v513_v0 = vmul.f32 %v1415_v15, %v1963_v27  ;;  %v693_v5 = vmul.f32 0.00390625, %v689_v58 }
 0x258   :  { %1424 = vrsqrt.f32 %v694_v14  ;;  %v632_v24 = vmul.f32 %v624_v35, %v1891_v61  ;;  %v633_v21 = vmul.f32 %v625_v48, %v1891_v61  ;;  %v612_v22 = vmul.f32 0.00390625, %v606_v9 }
 0x259   :  { %v536_v39 = vmul.f32 %v1891_v61, %v512_v25  ;;  %v537_v11 = vmul.f32 %v1891_v61, %v513_v0  ;;  %v697_v4 = vadd.f32 1e-05, %v693_v5  ;;  %v1417_v18 = vpop.eup %1416 }
 0x25a   :  { %v640_v49 = vadd.f32 %v632_v24, %v1937_v52  ;;  %v641_v51 = vadd.f32 %v633_v21, %v1937_v52  ;;  %v616_v53 = vadd.f32 1e-05, %v612_v22  ;;  %v704_v33 = vmul.f32 %v1417_v18, %v1988_v26 }
 0x25b   :  { %v686_v56 = vpop.xlane.xlu1 %685  ;;  %v1419_v27 = vpop.eup %1418  ;;  %v560_v41 = vadd.f32 %v1937_v52, %v536_v39  ;;  %v561_v6 = vadd.f32 %v1937_v52, %v537_v11  ;;  %v705_v8 = vmul.f32 %v1417_v18, %v1991_v38  ;;  %1426 = vrsqrt.f32 %v697_v4 }
 0x25c   :  { %816 = vst [vmem:[#allocation8 + $0x50] sm:$0xff] %v640_v49  ;;  %817 = vst [vmem:[#allocation8 + $0x58] sm:$0xff] %v641_v51  ;;  %v516_v43 = vmul.f32 %v1419_v27, %v1966_v16  ;;  %v517_v3 = vmul.f32 %v1419_v27, %v1969_v42  ;;  %v692_v28 = vmul.f32 0.00390625, %v686_v56  ;;  %v712_v15 = vmul.f32 %v704_v33, %v1891_v61 }
 0x25d   :  { %814 = vst [vmem:[#allocation8 + $0x40] sm:$0xff] %v560_v41  ;;  %815 = vst [vmem:[#allocation8 + $0x48] sm:$0xff] %v561_v6  ;;  %v713_v35 = vmul.f32 %v705_v8, %v1891_v61  ;;  %1428 = vrsqrt.f32 %v616_v53 }
 0x25e   :  { %v1421_v14 = vpop.eup %1420  ;;  %v540_v26 = vmul.f32 %v1913_v23, %v516_v43  ;;  %v541_v38 = vmul.f32 %v1913_v23, %v517_v3  ;;  %v720_v42 = vadd.f32 %v712_v15, %v1937_v52  ;;  %v696_v9 = vadd.f32 1e-05, %v692_v28 }
 0x25f   :  { %v622_v48 = vmul.f32 %v1421_v14, %v1996_v62  ;;  %v623_v16 = vmul.f32 %v1421_v14, %v1999_v37  ;;  %v721_v58 = vadd.f32 %v713_v35, %v1937_v52 }
 0x260   :  { %v564_v0 = vadd.f32 %v1935_v50, %v540_v26  ;;  %v565_v5 = vadd.f32 %v1935_v50, %v541_v38  ;;  %818 = vst [vmem:[#allocation8 + $0x60] sm:$0xff] %v720_v42  ;;  %1430 = vrsqrt.f32 %v696_v9 }
 0x261   :  { %v1423_v25 = vpop.eup %1422  ;;  %v630_v24 = vmul.f32 %v622_v48, %v1933_v45  ;;  %v631_v21 = vmul.f32 %v623_v16, %v1933_v45  ;;  %819 = vst [vmem:[#allocation8 + $0x68] sm:$0xff] %v721_v58 }
 0x262   :  { %v1425_v22 = vpop.eup %1424  ;;  %v628_v62 = vmul.f32 %v1423_v25, %v2016_v17  ;;  %v629_v37 = vmul.f32 %v1423_v25, %v2019_v57  ;;  %830 = vst [vmem:[#allocation8 + $0xc0] sm:$0xff] %v564_v0  ;;  %831 = vst [vmem:[#allocation8 + $0xc8] sm:$0xff] %v565_v5 }
 0x263   :  { %v638_v39 = vadd.f32 %v630_v24, %v1923_v40  ;;  %v639_v11 = vadd.f32 %v631_v21, %v1923_v40  ;;  %v702_v4 = vmul.f32 %v1425_v22, %v2006_v2  ;;  %v703_v18 = vmul.f32 %v1425_v22, %v2009_v54 }
 0x264   :  { %v636_v49 = vmul.f32 %v628_v62, %v1913_v23  ;;  %v637_v51 = vmul.f32 %v629_v37, %v1913_v23 }
 0x265   :  { %808 = vst [vmem:[#allocation8 + $0x10] sm:$0xff] %v638_v39  ;;  %809 = vst [vmem:[#allocation8 + $0x18] sm:$0xff] %v639_v11  ;;  %v710_v17 = vmul.f32 %v702_v4, %v1933_v45  ;;  %v711_v57 = vmul.f32 %v703_v18, %v1933_v45  ;;  %v1427_v27 = vpop.eup %1426 }
 0x266   :  { %v644_v53 = vadd.f32 %v636_v49, %v1935_v50  ;;  %v645_v56 = vadd.f32 %v637_v51, %v1935_v50  ;;  %v708_v6 = vmul.f32 %v1427_v27, %v2036_v59  ;;  %v709_v33 = vmul.f32 %v1427_v27, %v2039_v10 }
 0x267   :  { %v718_v41 = vadd.f32 %v710_v17, %v1923_v40  ;;  %v719_v2 = vadd.f32 %v711_v57, %v1923_v40  ;;  %v1429_v54 = vpop.eup %1428 }
 0x268   :  { %832 = vst [vmem:[#allocation8 + $0xd0] sm:$0xff] %v644_v53  ;;  %833 = vst [vmem:[#allocation8 + $0xd8] sm:$0xff] %v645_v56  ;;  %v626_v8 = vmul.f32 %v1429_v54, %v2026_v20  ;;  %v627_v43 = vmul.f32 %v1429_v54, %v2029_v63  ;;  %v716_v3 = vmul.f32 %v708_v6, %v1913_v23 }
 0x269   :  { %810 = vst [vmem:[#allocation8 + $0x20] sm:$0xff] %v718_v41  ;;  %811 = vst [vmem:[#allocation8 + $0x28] sm:$0xff] %v719_v2  ;;  %v717_v28 = vmul.f32 %v709_v33, %v1913_v23 }
 0x26a   :  { %v634_v14 = vmul.f32 %v626_v8, %v1893_v29  ;;  %v635_v15 = vmul.f32 %v627_v43, %v1893_v29  ;;  %v1431_v35 = vpop.eup %1430  ;;  %v724_v26 = vadd.f32 %v716_v3, %v1935_v50 }
 0x26b   :  { %v725_v59 = vadd.f32 %v717_v28, %v1935_v50  ;;  %v706_v20 = vmul.f32 %v1431_v35, %v2042_v46  ;;  %v707_v63 = vmul.f32 %v1431_v35, %v2045_v47  ;;  %v968_v35 = vsel %vm964_vm2, %v1903_v12, 0.0 }
 0x26c   :  { %v642_v10 = vadd.f32 %v634_v14, %v1931_v44  ;;  %v643_v38 = vadd.f32 %v635_v15, %v1931_v44  ;;  %834 = vst [vmem:[#allocation8 + $0xe0] sm:$0xff] %v724_v26 }
 0x26d   :  { %835 = vst [vmem:[#allocation8 + $0xe8] sm:$0xff] %v725_v59  ;;  %v714_v48 = vmul.f32 %v706_v20, %v1893_v29  ;;  %v715_v16 = vmul.f32 %v707_v63, %v1893_v29 }
 0x26e   :  { %824 = vst [vmem:[#allocation8 + $0x90] sm:$0xff] %v642_v10  ;;  %825 = vst [vmem:[#allocation8 + $0x98] sm:$0xff] %v643_v38 }
 0x26f   :  { %v722_v42 = vadd.f32 %v714_v48, %v1931_v44  ;;  %v723_v58 = vadd.f32 %v715_v16, %v1931_v44  ;;  %v974_v16 = vsel %vm964_vm2, %v1921_v34, 0.0 }
 0x271   :  { %826 = vst [vmem:[#allocation8 + $0xa0] sm:$0xff] %v722_v42  ;;  %827 = vst [vmem:[#allocation8 + $0xa8] sm:$0xff] %v723_v58 }
 0x286   :  { %v2176_v9 = vpop.xlane.xlu1 %1074 }
 0x28a   :  { %v2178_v25 = vpop.xlane.xlu1 %1226 }
 0x28b   :  { %v2180_v46 = vpop.xlane.xlu0 %1077 }
 0x28f   :  { %v2182_v47 = vpop.xlane.xlu0 %1229  ;;  %v2184_v0 = vpop.xlane.xlu1 %1080 }
 0x293   :  { %v2186_v5 = vpop.xlane.xlu0 %1083  ;;  %v2188_v24 = vpop.xlane.xlu1 %1232 }
 0x297   :  { %v2190_v21 = vpop.xlane.xlu0 %1235  ;;  %v760_v22 = vpop.xlane.xlu1 %759 }
 0x298   :  { %v770_v62 = vmul.f32 0.00390625, %v760_v22 }
 0x29a   :  { %v774_v37 = vadd.f32 1e-05, %v770_v62  ;;  %v2465_v62 = vld [vmem:[#allocation15_spill] sm:$0xff] }
 0x29b   :  { %v737_v39 = vpop.xlane.xlu0 %736  ;;  %v766_v11 = vpop.xlane.xlu1 %765 }
 0x29c   :  { %1432 = vrsqrt.f32 %v774_v37  ;;  %v741_v4 = vmul.f32 0.00390625, %v737_v39  ;;  %v772_v18 = vmul.f32 0.00390625, %v766_v11  ;;  %v1149_v37 = vsel %vm964_vm2, %v2465_v62, 0.0 }
 0x29e   :  { %v2193_v49 = vsub.f32 %v1886_v55, %v741_v4  ;;  %v2196_v51 = vsub.f32 %v1889_v60, %v741_v4  ;;  %v776_v17 = vadd.f32 1e-05, %v772_v18  ;;  %v2466_v18 = vld [vmem:[#allocation16_spill] sm:$0xff] }
 0x29f   :  { %v763_v57 = vpop.xlane.xlu0 %762  ;;  %v967_v53 = vpop.xlane.xlu1 %966 }
 0x2a0   :  { %1434 = vrsqrt.f32 %v776_v17  ;;  %v771_v56 = vmul.f32 0.00390625, %v763_v57  ;;  %v977_v27 = vmul.f32 0.015625, %v967_v53  ;;  %v756_v41 = vmul.f32 %v2193_v49, %v2193_v49  ;;  %v2467_v57 = vld [vmem:[#allocation17_spill] sm:$0xff] }
 0x2a1   :  { %v757_v2 = vmul.f32 %v2196_v51, %v2196_v51  ;;  %v1086_v17 = vmul.f32 0.015625, %v2180_v46 }
 0x2a2   :  { %v775_v54 = vadd.f32 1e-05, %v771_v56  ;;  %v2203_v6 = vsub.f32 %v1895_v7, %v977_v27  ;;  %v2468_v56 = vld [vmem:[#allocation18_spill] sm:$0xff] }
 0x2a3   :  { %v973_v55 = vpop.xlane.xlu1 %972  ;;  %v767_v33 = vadd.f32 %v757_v2, %v756_v41  ;;  %v1158_v27 = vsel %vm964_vm2, %v2468_v56, 0.0  ;;  %v1087_v41 = vmul.f32 0.015625, %v2184_v0  ;;  %v1239_v0 = vmul.f32 0.015625, %v2188_v24  ;;  %v2286_v24 = vld [vmem:[#allocation7 + $0x18] sm:$0xff] }
 0x2a4   :  { %1436 = vrsqrt.f32 %v775_v54  ;;  %v979_v60 = vmul.f32 0.015625, %v973_v55  ;;  %v985_v8 = vmul.f32 %v2203_v6, %v2203_v6  ;;  %v1088_v54 = vmul.f32 0.015625, %v2186_v5 }
 0x2a5   :  { %768 = vadd.xlane.f32.xlu0 %v767_v33 }
 0x2a6   :  { %v1433_v43 = vpop.eup %1432  ;;  %v2208_v3 = vsub.f32 %v1911_v19, %v979_v60  ;;  %v989_v28 = vsel %vm964_vm2, %v985_v8, 0.0  ;;  %v2271_v33 = vsub.f32 %v1921_v34, %v1088_v54 }
 0x2a7   :  { %v782_v14 = vmul.f32 %v1433_v43, %v2063_v31  ;;  %v783_v15 = vmul.f32 %v1433_v43, %v2066_v32  ;;  %990 = vadd.xlane.f32.xlu1 %v989_v28  ;;  %v1472_v43 = vld [vmem:[#allocation7 + $0x8] sm:$0xff]  ;;  %v1609_v28 = vmov 29  }
 0x2a8   :  { %v987_v26 = vmul.f32 %v2208_v3, %v2208_v3  ;;  %v1096_v5 = vmul.f32 %v2271_v33, %v2271_v33 }
 0x2a9   :  { %v790_v59 = vmul.f32 %v782_v14, %v1933_v45  ;;  %v791_v10 = vmul.f32 %v783_v15, %v1933_v45  ;;  %969 = vadd.xlane.f32.xlu0 %v968_v35  ;;  %v1474_v14 = vld [vmem:[#allocation7] sm:$0xff]  ;;  %v1475_v15 = vld [vmem:[#allocation7 + $0x10] sm:$0xff] }
 0x2aa   :  { %v1435_v38 = vpop.eup %1434  ;;  %v995_v20 = vsel %vm964_vm2, %v987_v26, 0.0 }
 0x2ab   :  { %v798_v63 = vadd.f32 %v790_v59, %v1923_v40  ;;  %v799_v31 = vadd.f32 %v791_v10, %v1923_v40  ;;  %v786_v32 = vmul.f32 %v1435_v38, %v2075_v36  ;;  %v787_v48 = vmul.f32 %v1435_v38, %v2078_v30  ;;  %996 = vadd.xlane.f32.xlu1 %v995_v20 }
 0x2ad   :  { %812 = vst [vmem:[#allocation8 + $0x30] sm:$0xff] %v798_v63  ;;  %813 = vst [vmem:[#allocation8 + $0x38] sm:$0xff] %v799_v31  ;;  %v794_v45 = vmul.f32 %v786_v32, %v1893_v29  ;;  %v795_v42 = vmul.f32 %v787_v48, %v1893_v29  ;;  %975 = vadd.xlane.f32.xlu0 %v974_v16  ;;  %v1237_v29 = vmul.f32 0.015625, %v2178_v25 }
 0x2ae   :  { %v1437_v58 = vpop.eup %1436  ;;  %v2248_v25 = vsub.f32 %v1903_v12, %v1086_v17 }
 0x2af   :  { %v802_v22 = vadd.f32 %v794_v45, %v1931_v44  ;;  %v803_v40 = vadd.f32 %v795_v42, %v1931_v44  ;;  %v784_v36 = vmul.f32 %v1437_v58, %v2083_v1  ;;  %v785_v30 = vmul.f32 %v1437_v58, %v2086_v13 }
 0x2b0   :  { %v1152_v1 = vsel %vm964_vm2, %v2466_v18, 0.0  ;;  %v2242_v13 = vsub.f32 %v2465_v62, %v1237_v29  ;;  %v1094_v2 = vmul.f32 %v2248_v25, %v2248_v25 }
 0x2b1   :  { %828 = vst [vmem:[#allocation8 + $0xb0] sm:$0xff] %v802_v22  ;;  %829 = vst [vmem:[#allocation8 + $0xb8] sm:$0xff] %v803_v40  ;;  %v792_v39 = vmul.f32 %v784_v36, %v1891_v61  ;;  %v793_v11 = vmul.f32 %v785_v30, %v1891_v61  ;;  %1150 = vadd.xlane.f32.xlu0 %v1149_v37  ;;  %v1155_v61 = vsel %vm964_vm2, %v2467_v57, 0.0 }
 0x2b2   :  { %v1245_v53 = vmul.f32 %v2242_v13, %v2242_v13 }
 0x2b3   :  { %v800_v4 = vadd.f32 %v792_v39, %v1937_v52  ;;  %v801_v44 = vadd.f32 %v793_v11, %v1937_v52  ;;  %v1238_v52 = vmul.f32 0.015625, %v2182_v47  ;;  %v2264_v47 = vsub.f32 %v1911_v19, %v1087_v41  ;;  %v2333_v41 = vpop.permute.xlu1 %1018 }
 0x2b4   :  { %v2278_v19 = vsub.f32 %v2467_v57, %v1239_v0 }
 0x2b5   :  { %820 = vst [vmem:[#allocation8 + $0x70] sm:$0xff] %v800_v4  ;;  %821 = vst [vmem:[#allocation8 + $0x78] sm:$0xff] %v801_v44  ;;  %1153 = vadd.xlane.f32.xlu0 %v1152_v1  ;;  %v2257_v46 = vsub.f32 %v2466_v18, %v1238_v52  ;;  %v1095_v60 = vmul.f32 %v2264_v47, %v2264_v47  ;;  %v1240_v52 = vmul.f32 0.015625, %v2190_v21 }
 0x2b6   :  { %v1247_v8 = vmul.f32 %v2278_v19, %v2278_v19 }
 0x2b7   :  { %v1246_v55 = vmul.f32 %v2257_v46, %v2257_v46 }
 0x2b9   :  { %1156 = vadd.xlane.f32.xlu0 %v1155_v61 }
 0x2bc   :  { %1253 = vrot.lane.b32.xlu1 %v1245_v53, %s1607_s29  ;;  %v2325_v53 = vsub.f32 %v2468_v56, %v1240_v52 }
 0x2bd   :  { %1159 = vadd.xlane.f32.xlu0 %v1158_v27 }
 0x2c0   :  { %1103 = vrot.lane.b32.xlu1 %v1094_v2, %s1607_s29 }
 0x2c4   :  { %1255 = vrot.lane.b32.xlu1 %v1246_v55, %s1607_s29 }
 0x2c8   :  { %1105 = vrot.lane.b32.xlu1 %v1095_v60, %s1607_s29 }
 0x2cc   :  { %1107 = vrot.lane.b32.xlu1 %v1096_v5, %s1607_s29 }
 0x2d0   :  { %1257 = vrot.lane.b32.xlu1 %v1247_v8, %s1607_s29 }
 0x2d4   :  { %1022 = vperm.xlu1 %1404, %v1472_v43  }
 0x2d8   :  { %1030 = vperm.xlu1 %1404, %v2286_v24  }
 0x2dc   :  { %1406 = vset.pattern.permute.xlu1 %v1609_v28 }
 0x2dd   :  { %1038 = vperm.xlu1 %1406, %v1474_v14  }
 0x2e1   :  { %1046 = vperm.xlu1 %1406, %v1475_v15  }
 0x332   :  { %v769_v35 = vpop.xlane.xlu0 %768 }
 0x333   :  { %v773_v26 = vmul.f32 0.00390625, %v769_v35 }
 0x335   :  { %v777_v59 = vadd.f32 1e-05, %v773_v26 }
 0x336   :  { %v970_v10 = vpop.xlane.xlu0 %969 }
 0x337   :  { %1438 = vrsqrt.f32 %v777_v59  ;;  %v978_v38 = vmul.f32 0.015625, %v970_v10 }
 0x339   :  { %v2290_v20 = vsub.f32 %v1903_v12, %v978_v38 }
 0x33a   :  { %v976_v63 = vpop.xlane.xlu0 %975 }
 0x33b   :  { %v980_v31 = vmul.f32 0.015625, %v976_v63  ;;  %v986_v32 = vmul.f32 %v2290_v20, %v2290_v20 }
 0x33d   :  { %v2295_v48 = vsub.f32 %v1921_v34, %v980_v31  ;;  %v992_v16 = vsel %vm964_vm2, %v986_v32, 0.0 }
 0x33e   :  { %993 = vadd.xlane.f32.xlu0 %v992_v16  ;;  %v1151_v45 = vpop.xlane.xlu0 %1150 }
 0x33f   :  { %v988_v42 = vmul.f32 %v2295_v48, %v2295_v48  ;;  %v1161_v2 = vmul.f32 0.015625, %v1151_v45 }
 0x341   :  { %v1439_v58 = vpop.eup %1438  ;;  %v998_v22 = vsel %vm964_vm2, %v988_v42, 0.0  ;;  %v2338_v54 = vsub.f32 %v2465_v62, %v1161_v2 }
 0x342   :  { %v788_v12 = vmul.f32 %v1439_v58, %v2193_v49  ;;  %v789_v40 = vmul.f32 %v1439_v58, %v2196_v51  ;;  %999 = vadd.xlane.f32.xlu0 %v998_v22  ;;  %v1154_v36 = vpop.xlane.xlu0 %1153 }
 0x343   :  { %v1162_v30 = vmul.f32 0.015625, %v1154_v36  ;;  %v1169_v5 = vmul.f32 %v2338_v54, %v2338_v54 }
 0x344   :  { %v796_v34 = vmul.f32 %v788_v12, %v1913_v23  ;;  %v797_v37 = vmul.f32 %v789_v40, %v1913_v23 }
 0x345   :  { %v2306_v39 = vsub.f32 %v2466_v18, %v1162_v30  ;;  %v1085_v18 = vmul.f32 0.015625, %v2176_v9  ;;  %v1248_v9 = vmul.f32 %v2325_v53, %v2325_v53 }
 0x346   :  { %v804_v11 = vadd.f32 %v796_v34, %v1935_v50  ;;  %v805_v29 = vadd.f32 %v797_v37, %v1935_v50  ;;  %v1157_v4 = vpop.xlane.xlu0 %1156 }
 0x347   :  { %v1170_v49 = vmul.f32 %v2306_v39, %v2306_v39  ;;  %v2321_v61 = vsub.f32 %v1895_v7, %v1085_v18  ;;  %v2335_v7 = vpop.xlane.xlu1 %990  ;;  %v1163_v55 = vmul.f32 0.015625, %v1157_v4 }
 0x348   :  { %836 = vst [vmem:[#allocation8 + $0xf0] sm:$0xff] %v804_v11  ;;  %837 = vst [vmem:[#allocation8 + $0xf8] sm:$0xff] %v805_v29 }
 0x349   :  { %v1176_v51 = vsel %vm964_vm2, %v1170_v49, 0.0  ;;  %v1093_v27 = vmul.f32 %v2321_v61, %v2321_v61  ;;  %v2341_v60 = vsub.f32 %v2467_v57, %v1163_v55 }
 0x34a   :  { %v1160_v44 = vpop.xlane.xlu0 %1159  ;;  %1177 = vadd.xlane.f32.xlu1 %v1176_v51 }
 0x34b   :  { %v1164_v1 = vmul.f32 0.015625, %v1160_v44  ;;  %v997_v21 = vpop.xlane.xlu1 %996 }
 0x34d   :  { %v2314_v23 = vsub.f32 %v2468_v56, %v1164_v1 }
 0x34f   :  { %v1172_v17 = vmul.f32 %v2314_v23, %v2314_v23  ;;  %v1254_v56 = vpop.permute.xlu1 %1253 }
 0x350   :  { %v1265_v62 = vsel %vm964_vm2, %v1254_v56, 0.0 }
 0x351   :  { %v1182_v50 = vsel %vm964_vm2, %v1172_v17, 0.0 }
 0x352   :  { %1183 = vadd.xlane.f32.xlu1 %v1182_v50 }
 0x353   :  { %v1104_v0 = vpop.permute.xlu1 %1103 }
 0x354   :  { %v1116_v57 = vsel %vm964_vm2, %v1104_v0, 0.0 }
 0x357   :  { %v1256_v8 = vpop.permute.xlu1 %1255 }
 0x358   :  { %1101 = vrot.lane.b32.xlu0 %v1093_v27, %s1607_s29  ;;  %v1268_v16 = vsel %vm964_vm2, %v1256_v8, 0.0 }
 0x35c   :  { %1259 = vrot.lane.b32.xlu0 %v1248_v9, %s1607_s29 }
 0x360   :  { %1026 = vperm.xlu0 %1405, %v1475_v15   ;;  %v1106_v15 = vpop.permute.xlu1 %1105 }
 0x361   :  { %v1119_v26 = vsel %vm964_vm2, %v1106_v15, 0.0 }
 0x364   :  { %1407 = vset.pattern.permute.xlu0 %v1609_v28  ;;  %v1173_v28 = vsel %vm964_vm2, %v1169_v5, 0.0  ;;  %v1108_v35 = vpop.permute.xlu1 %1107 }
 0x365   :  { %1042 = vperm.xlu0 %1407, %v1472_v43   ;;  %v1171_v43 = vmul.f32 %v2341_v60, %v2341_v60  ;;  %v1122_v45 = vsel %vm964_vm2, %v1108_v35, 0.0 }
 0x367   :  { %v1179_v14 = vsel %vm964_vm2, %v1171_v43, 0.0 }
 0x368   :  { %v1258_v59 = vpop.permute.xlu1 %1257 }
 0x369   :  { %v1271_v10 = vsel %vm964_vm2, %v1258_v59, 0.0 }
 0x384   :  { %1174 = vadd.xlane.f32.xlu0 %v1173_v28 }
 0x388   :  { %1180 = vadd.xlane.f32.xlu0 %v1179_v14 }
 0x38c   :  { %1266 = vadd.xlane.f32.xlu0 %v1265_v62 }
 0x390   :  { %1117 = vadd.xlane.f32.xlu0 %v1116_v57 }
 0x394   :  { %1120 = vadd.xlane.f32.xlu0 %v1119_v26 }
 0x398   :  { %1272 = vadd.xlane.f32.xlu0 %v1271_v10 }
 0x3ae   :  { %1050 = vperm.xlu0 %1407, %v2286_v24  }
 0x3cb   :  { %v994_v38 = vpop.xlane.xlu0 %993 }
 0x3cf   :  { %v2354_v63 = vpop.xlane.xlu0 %999 }
 0x3d3   :  { %v1102_v31 = vpop.permute.xlu0 %1101 }
 0x3d4   :  { %v1113_v32 = vsel %vm964_vm2, %v1102_v31, 0.0 }
 0x3d5   :  { %1114 = vadd.xlane.f32.xlu1 %v1113_v32 }
 0x3d7   :  { %v1260_v42 = vpop.permute.xlu0 %1259 }
 0x3d8   :  { %v1274_v58 = vsel %vm964_vm2, %v1260_v42, 0.0 }
 0x3d9   :  { %1269 = vadd.xlane.f32.xlu1 %v1268_v16 }
 0x3dd   :  { %1123 = vadd.xlane.f32.xlu1 %v1122_v45 }
 0x3df   :  { %v2360_v24 = vpop.permute.xlu0 %1026 }
 0x3e1   :  { %1275 = vadd.xlane.f32.xlu1 %v1274_v58 }
 0x3e2   :  { %1553 = shalt.err (!%p1550_p0)
}
 0x3e3   :  { %s1554_s9 = scalar_lea.hbm %s2451_s3, 4096 }
 0x3e4   :  { %p1555_p1 = scmp.ne.s32.totalorder %s2451_s3, %s1554_s9  ;;  %p1558_p2 = scmp.lt.u32.totalorder %s1554_s9, %s2451_s3 }
 0x3e6   :  { %p1560_p3 = pnand %p1558_p2, %p1555_p1 }
 0x3e8   :  { %1563 = shalt.err (!%p1560_p3)
}
 0x3e9   :  { %s1611_s1 = smov 1024   ;;  %v2375_v22 = vpop.permute.xlu0 %1042  ;;  %v1002_v30 = vmul.f32 0.015625, %v994_v38  ;;  %v1003_v37 = vmul.f32 0.015625, %v997_v21  ;;  %v2377_v17 = vpop.permute.xlu1 %1022 }
 0x3ea   :  { %1328 = dma.vmem_to_hbm [thread:$0]  %s1323_s5, 4096, %s2451_s3, [#allocation4], %s1611_s1, %s1611_s1, %s1607_s29  }
 0x3eb   :  { %v1006_v11 = vadd.f32 1e-05, %v1002_v30  ;;  %v1007_v44 = vadd.f32 1e-05, %v1003_v37  ;;  %s1612_s3 = smov [#allocation9]  }
 0x3ec   :  { %s1334_s16 = sshll.u32 %s1612_s3, 4  ;;  %s1335_s16 = int_to_ptr.vmem [resolvable:$true] %s1334_s16 }
 0x3ed   :  { %v2380_v0 = vpop.permute.xlu1 %1030  ;;  %s1564_s17 = scalar_lea.vmem %s1335_s16, 1024  ;;  %p1569_p5 = scmp.lt.s32.totalorder %s1335_s16, %s1335_s16 }
 0x3ee   :  { %p1565_p4 = scmp.ne.s32.totalorder %s1335_s16, %s1564_s17  ;;  %p1570_p6 = scmp.lt.s32.totalorder %s1564_s17, %s1564_s17 }
 0x3f0   :  { %p1571_p7 = por %p1570_p6, %p1569_p5 }
 0x3f2   :  { %p1572_p8 = pnand %p1571_p7, %p1565_p4 }
 0x411   :  { %v1175_v12 = vpop.xlane.xlu0 %1174 }
 0x412   :  { %v1185_v40 = vmul.f32 0.015625, %v1175_v12 }
 0x414   :  { %v1189_v36 = vadd.f32 1e-05, %v1185_v40 }
 0x415   :  { %v1181_v34 = vpop.xlane.xlu0 %1180 }
 0x416   :  { %1440 = vrsqrt.f32 %v1189_v36  ;;  %v1187_v49 = vmul.f32 0.015625, %v1181_v34 }
 0x417   :  { %1442 = vrsqrt.f32 %v1006_v11 }
 0x418   :  { %v1191_v50 = vadd.f32 1e-05, %v1187_v49 }
 0x419   :  { %v1267_v29 = vpop.xlane.xlu0 %1266 }
 0x41a   :  { %v1277_v4 = vmul.f32 0.015625, %v1267_v29 }
 0x41c   :  { %v1281_v51 = vadd.f32 1e-05, %v1277_v4 }
 0x41d   :  { %v1118_v1 = vpop.xlane.xlu0 %1117 }
 0x41e   :  { %1444 = vrsqrt.f32 %v1281_v51  ;;  %v1126_v18 = vmul.f32 0.015625, %v1118_v1 }
 0x41f   :  { %1446 = vrsqrt.f32 %v1007_v44 }
 0x420   :  { %v1130_v52 = vadd.f32 1e-05, %v1126_v18  ;;  %v1441_v9 = vpop.eup %1440  ;;  %v1001_v18 = vmul.f32 0.015625, %v2335_v7 }
 0x421   :  { %v1121_v27 = vpop.xlane.xlu0 %1120  ;;  %v1197_v2 = vmul.f32 %v1441_v9, %v2338_v54  ;;  %v1443_v8 = vpop.eup %1442 }
 0x422   :  { %1448 = vrsqrt.f32 %v1130_v52  ;;  %v1127_v56 = vmul.f32 0.015625, %v1121_v27  ;;  %v1014_v35 = vmul.f32 %v1443_v8, %v2290_v20  ;;  %v2386_v54 = vpop.permute.xlu1 %1038  ;;  %v1005_v27 = vadd.f32 1e-05, %v1001_v18 }
 0x423   :  { %1450 = vrsqrt.f32 %v1191_v50  ;;  %v1201_v14 = vmul.f32 %v1197_v2, %v2333_v41 }
 0x424   :  { %v1131_v21 = vadd.f32 1e-05, %v1127_v56  ;;  %v1004_v56 = vmul.f32 0.015625, %v2354_v63 }
 0x425   :  { %v1273_v55 = vpop.xlane.xlu0 %1272  ;;  %v1205_v59 = vadd.f32 %v1201_v14, %v2386_v54 }
 0x426   :  { %1452 = vrsqrt.f32 %v1131_v21  ;;  %v1279_v5 = vmul.f32 0.015625, %v1273_v55  ;;  %v1047_v34 = vpop.permute.xlu1 %1046  ;;  %v1008_v2 = vadd.f32 1e-05, %v1004_v56 }
 0x428   :  { %v1445_v28 = vpop.eup %1444  ;;  %v1283_v43 = vadd.f32 1e-05, %v1279_v5 }
 0x429   :  { %v1289_v15 = vmul.f32 %v1445_v28, %v2242_v13  ;;  %v1447_v62 = vpop.eup %1446  ;;  %v1034_v13 = vmul.f32 %v2377_v17, %v1014_v35 }
 0x42a   :  { %1454 = vrsqrt.f32 %v1283_v43  ;;  %v1015_v32 = vmul.f32 %v1447_v62, %v2208_v3  ;;  %v1178_v1 = vpop.xlane.xlu1 %1177 }
 0x42b   :  { %v1293_v57 = vmul.f32 %v1289_v15, %v2333_v41  ;;  %v1054_v58 = vadd.f32 %v2375_v22, %v1034_v13  ;;  %v1186_v50 = vmul.f32 0.015625, %v1178_v1  ;;  %1456 = vrsqrt.f32 %v1005_v27 }
 0x42c   :  { %v1449_v26 = vpop.eup %1448  ;;  %v1035_v42 = vmul.f32 %v2360_v24, %v1015_v32 }
 0x42d   :  { %v1297_v10 = vadd.f32 %v1293_v57, %v2386_v54  ;;  %v1138_v38 = vmul.f32 %v1449_v26, %v2248_v25  ;;  %v1451_v31 = vpop.eup %1450  ;;  %v1190_v9 = vadd.f32 1e-05, %v1186_v50 }
 0x42e   :  { %v1199_v12 = vmul.f32 %v1451_v31, %v2341_v60  ;;  %v1055_v37 = vadd.f32 %v1047_v34, %v1035_v42  ;;  %v1184_v52 = vpop.xlane.xlu1 %1183 }
 0x42f   :  { %v1305_v16 = vsel %vm964_vm2, %v1205_v59, %v1297_v10  ;;  %v1142_v20 = vmul.f32 %v1138_v38, %v2377_v17  ;;  %1458 = vrsqrt.f32 %v1190_v9  ;;  %v1188_v55 = vmul.f32 0.015625, %v1184_v52 }
 0x430   :  { %v1453_v45 = vpop.eup %1452  ;;  %1310 = vst [vmem:[#allocation9 + $0x8] sm:$0xff] %v1305_v16  ;;  %v1203_v11 = vmul.f32 %v1199_v12, %v2360_v24 }
 0x431   :  { %v1146_v40 = vadd.f32 %v1142_v20, %v2375_v22  ;;  %v1139_v25 = vmul.f32 %v1453_v45, %v2264_v47  ;;  %v1192_v43 = vadd.f32 1e-05, %v1188_v55 }
 0x432   :  { %v1207_v51 = vadd.f32 %v1203_v11, %v1047_v34 }
 0x433   :  { %v1302_v3 = vsel %vm964_vm2, %v1054_v58, %v1146_v40  ;;  %v1143_v36 = vmul.f32 %v1139_v25, %v2360_v24 }
 0x434   :  { %v1455_v30 = vpop.eup %1454  ;;  %1311 = vst [vmem:[#allocation9 + $0x10] sm:$0xff] %v1302_v3 }
 0x435   :  { %v1147_v29 = vadd.f32 %v1143_v36, %v1047_v34  ;;  %v1291_v4 = vmul.f32 %v1455_v30, %v2278_v19  ;;  %v1457_v15 = vpop.eup %1456  ;;  %v1051_v30 = vpop.permute.xlu0 %1050 }
 0x436   :  { %v1013_v26 = vmul.f32 %v1457_v15, %v2203_v6 }
 0x437   :  { %v1303_v49 = vsel %vm964_vm2, %v1055_v37, %v1147_v29  ;;  %v1295_v60 = vmul.f32 %v1291_v4, %v2360_v24 }
 0x438   :  { %1313 = vst [vmem:[#allocation9 + $0x20] sm:$0xff] %v1303_v49  ;;  %v1033_v13 = vmul.f32 %v2333_v41, %v1013_v26 }
 0x439   :  { %v1299_v47 = vadd.f32 %v1295_v60, %v1047_v34  ;;  %v1459_v35 = vpop.eup %1458 }
 0x43a   :  { %v1198_v38 = vmul.f32 %v1459_v35, %v2306_v39  ;;  %v1053_v45 = vadd.f32 %v2386_v54, %v1033_v13 }
 0x43b   :  { %v1307_v44 = vsel %vm964_vm2, %v1207_v51, %v1299_v47 }
 0x43c   :  { %1314 = vst [vmem:[#allocation9 + $0x28] sm:$0xff] %v1307_v44  ;;  %v1202_v42 = vmul.f32 %v1198_v38, %v2377_v17 }
 0x462   :  { %v1115_v19 = vpop.xlane.xlu1 %1114 }
 0x463   :  { %v1125_v21 = vmul.f32 0.015625, %v1115_v19 }
 0x465   :  { %v1129_v24 = vadd.f32 1e-05, %v1125_v21 }
 0x466   :  { %v1270_v5 = vpop.xlane.xlu1 %1269 }
 0x467   :  { %1460 = vrsqrt.f32 %v1129_v24  ;;  %v1278_v8 = vmul.f32 0.015625, %v1270_v5 }
 0x468   :  { %1462 = vrsqrt.f32 %v1008_v2 }
 0x469   :  { %v1282_v28 = vadd.f32 1e-05, %v1278_v8 }
 0x46a   :  { %v1124_v7 = vpop.xlane.xlu1 %1123 }
 0x46b   :  { %1464 = vrsqrt.f32 %v1282_v28  ;;  %v1128_v14 = vmul.f32 0.015625, %v1124_v7 }
 0x46c   :  { %1466 = vrsqrt.f32 %v1192_v43 }
 0x46d   :  { %v1132_v62 = vadd.f32 1e-05, %v1128_v14 }
 0x46e   :  { %v1276_v63 = vpop.xlane.xlu1 %1275 }
 0x46f   :  { %1468 = vrsqrt.f32 %v1132_v62  ;;  %v1280_v57 = vmul.f32 0.015625, %v1276_v63 }
 0x471   :  { %v1461_v59 = vpop.eup %1460  ;;  %v1284_v10 = vadd.f32 1e-05, %v1280_v57 }
 0x472   :  { %v1137_v31 = vmul.f32 %v1461_v59, %v2321_v61  ;;  %v1463_v32 = vpop.eup %1462 }
 0x473   :  { %1470 = vrsqrt.f32 %v1284_v10  ;;  %v1016_v39 = vmul.f32 %v1463_v32, %v2295_v48 }
 0x474   :  { %v1141_v16 = vmul.f32 %v1137_v31, %v2333_v41  ;;  %v1206_v41 = vadd.f32 %v1202_v42, %v2375_v22 }
 0x475   :  { %v1465_v20 = vpop.eup %1464 }
 0x476   :  { %v1145_v58 = vadd.f32 %v1141_v16, %v2386_v54  ;;  %v1290_v6 = vmul.f32 %v1465_v20, %v2257_v46  ;;  %v1467_v12 = vpop.eup %1466  ;;  %v1036_v54 = vmul.f32 %v2380_v0, %v1016_v39 }
 0x477   :  { %v1200_v46 = vmul.f32 %v1467_v12, %v2314_v23 }
 0x478   :  { %v1301_v61 = vsel %vm964_vm2, %v1053_v45, %v1145_v58  ;;  %v1294_v40 = vmul.f32 %v1290_v6, %v2377_v17  ;;  %v1056_v17 = vadd.f32 %v1051_v30, %v1036_v54 }
 0x479   :  { %v1469_v25 = vpop.eup %1468  ;;  %1309 = vst [vmem:[#allocation9] sm:$0xff] %v1301_v61  ;;  %v1204_v4 = vmul.f32 %v1200_v46, %v2380_v0 }
 0x47a   :  { %v1298_v3 = vadd.f32 %v1294_v40, %v2375_v22  ;;  %v1140_v36 = vmul.f32 %v1469_v25, %v2271_v33 }
 0x47b   :  { %v1208_v23 = vadd.f32 %v1204_v4, %v1051_v30 }
 0x47c   :  { %v1306_v34 = vsel %vm964_vm2, %v1206_v41, %v1298_v3  ;;  %v1144_v48 = vmul.f32 %v1140_v36, %v2380_v0 }
 0x47d   :  { %v1471_v37 = vpop.eup %1470  ;;  %1312 = vst [vmem:[#allocation9 + $0x18] sm:$0xff] %v1306_v34 }
 0x47e   :  { %v1148_v11 = vadd.f32 %v1144_v48, %v1051_v30  ;;  %v1292_v29 = vmul.f32 %v1471_v37, %v2325_v53 }
 0x480   :  { %v1304_v22 = vsel %vm964_vm2, %v1056_v17, %v1148_v11  ;;  %v1296_v33 = vmul.f32 %v1292_v29, %v2380_v0 }
 0x481   :  { %1315 = vst [vmem:[#allocation9 + $0x30] sm:$0xff] %v1304_v22 }
 0x482   :  { %v1300_v49 = vadd.f32 %v1296_v33, %v1051_v30 }
 0x484   :  { %v1308_v60 = vsel %vm964_vm2, %v1208_v23, %v1300_v49 }
 0x485   :  { %1316 = vst [vmem:[#allocation9 + $0x38] sm:$0xff] %v1308_v60 }
 0x486   :  { %1575 = shalt.err (!%p1572_p8)
}
 0x487   :  { %s1576_s20 = scalar_lea.hbm %s2452_s4, 1024 }
 0x488   :  { %p1577_p9 = scmp.ne.s32.totalorder %s2452_s4, %s1576_s20  ;;  %p1580_p10 = scmp.lt.u32.totalorder %s1576_s20, %s2452_s4 }
 0x48a   :  { %p1582_p11 = pnand %p1580_p10, %p1577_p9 }
 0x48c   :  { %1585 = shalt.err (!%p1582_p11)
}
 0x48d   :  { %1340 = dma.vmem_to_hbm [thread:$0]  %s1335_s16, 1024, %s2452_s4, [#allocation10], %s1595_s25, %s1595_s25, %s1596_s26  }
 0x48e   :  { %1590 = dma.done.wait [#allocation4], 4096  }
 0x48f   :  { %1591 = vsyncadd [#allocation4], 4294963200 }
 0x490   :  { %1592 = dma.done.wait [#allocation10], 1024  }
 0x491   :  { %1593 = vsyncadd [#allocation10], 4294966272 }
 0x492   :  { %1347 = vsyncpa [#allocation3], 1 }
 0x493   :  { %1348 = vsyncpa [#allocation6], 1 }
 0x494   :  { %1349 = vsyncpa [#allocation4], 1 }
 0x495   :  { %1350 = vsyncpa [#allocation10], 1 }

</bundles_post_ra>
